<compile_context>
chip_gen: v6e
topology: v6e:2x2x1
jax: 0.10.0
libtpu: 0.0.40
codegen_flags: <defaults>
</compile_context>

<pallas_src>
import functools

import jax
import jax.numpy as jnp
from jax import lax
from jax.experimental import pallas as pl
from jax.experimental.pallas import tpu as pltpu

BN_EPS = 1e-5


# ----------------------------- Pallas kernel -------------------------------

def _mtca_fused_kernel(x_ref, w0_ref, b0_ref, w_ref, b_ref, o_ref, *,
                       dils, t_len):
    # x_ref:  (C, PT)         `pack` samples side-by-side on the lane axis, f32
    # w0_ref: (C, C)          initial 1x1 conv weight, bf16
    # b0_ref: (C, 1)          initial 1x1 conv bias, f32
    # w_ref:  (3*NB, C, C)    per-block folded taps [t-dil | t | t+dil], bf16
    # b_ref:  (NB, C, 1)      per-block folded BN shifts, f32
    x = x_ref[...]
    C, PT = x.shape

    # Per-sample time position: masks must not leak across packed samples.
    pos_t = lax.broadcasted_iota(jnp.int32, (C, PT), 1) % t_len

    # Edge masks hoisted out of the unrolled block loop (one pair per unique
    # dilation; JAX does not CSE compares/broadcasts across unrolls).
    uniq = sorted(set(dils))
    mask_prev = {d: pos_t >= d for d in uniq}
    mask_next = {d: pos_t < t_len - d for d in uniq}

    # Initial Conv1d(k=1, bias=True) + ReLU.  bf16 MXU operands, f32 accum.
    act = jnp.dot(w0_ref[...], x.astype(jnp.bfloat16),
                  preferred_element_type=jnp.float32)
    act = jnp.maximum(act + b0_ref[...], 0.0)

    # MPTC blocks: dilation is static per block -> unrolled Python loop,
    # activation stays resident on-chip between blocks.
    for blk, dil in enumerate(dils):
        # x[:, t-dil] and x[:, t+dil] with per-sample zero padding at the
        # edges: XLU roll (vex slot) + cheap VPU select, no concat copies.
        x_prev = jnp.where(mask_prev[dil],
                           pltpu.roll(act, dil, axis=1), 0.0)
        x_next = jnp.where(mask_next[dil],
                           pltpu.roll(act, PT - dil, axis=1), 0.0)
        # Three accumulating (C,C)x(C,PT) bf16 dots into one f32 accumulator
        # (no stacked (3C,PT) operand is ever materialized).
        acc = jnp.dot(w_ref[3 * blk + 1], act.astype(jnp.bfloat16),
                      preferred_element_type=jnp.float32)
        acc = acc + jnp.dot(w_ref[3 * blk + 0], x_prev.astype(jnp.bfloat16),
                            preferred_element_type=jnp.float32)
        acc = acc + jnp.dot(w_ref[3 * blk + 2], x_next.astype(jnp.bfloat16),
                            preferred_element_type=jnp.float32)
        act = jnp.maximum(acc + b_ref[blk], 0.0)                # (C,1) bcast

    o_ref[...] = act


# ------------------------------ kernel wrapper ------------------------------

def _bn_scale_shift(bn):
    # TODO(synk): training-mode BatchNorm (batch statistics) is not modeled;
    # BN is folded with running stats (inference semantics).
    s = bn["gamma"] / jnp.sqrt(bn["var"] + BN_EPS)
    return s, bn["beta"] - bn["mean"] * s


def _fold_mptc(p):
    """Fold one MPTC block (conv3+BN, conv1+BN, residual BN) into three (C, C)
    tap weights [t-dil, t, t+dil] and a (C, 1) bias."""
    s1, sh1 = _bn_scale_shift(p["bn1"])
    s3, sh3 = _bn_scale_shift(p["bn3"])
    sr, shr = _bn_scale_shift(p["bnr"])
    wl = s3[:, None] * p["w3"][:, :, 0]
    wm = s3[:, None] * p["w3"][:, :, 1] + s1[:, None] * p["w1"] + jnp.diag(sr)
    wr = s3[:, None] * p["w3"][:, :, 2]
    b = (sh1 + sh3 + shr)[:, None]                     # (C, 1)
    return (wl, wm, wr), b


def mtca_forward(x, params):
    N, C, T = x.shape
    blocks = [mp for layer in params["layers"] for mp in layer]
    dils = tuple(int(mp["dil"]) for mp in blocks)
    folded = [_fold_mptc(mp) for mp in blocks]
    NB = len(blocks)

    # (3*NB, C, C) bf16 tap weights, (NB, C, 1) f32 biases.
    w_all = jnp.stack([w for taps, _ in folded for w in taps]
                      ).astype(jnp.bfloat16)
    b_all = jnp.stack([b for _, b in folded])
    w0 = params["conv_w"].astype(jnp.bfloat16)
    b0 = params["conv_b"]

    # Lane packing: put `pack` samples side by side on the time/lane axis so
    # the matmul RHS is >=256 lanes wide (v6e/v7x MXU width) while keeping
    # >=2 grid steps so both v7x TensorCores get work (harmless on v5e, where
    # T=128 already fills the 128-wide MXU lanes).
    pack = 2 if (T < 256 and N % 2 == 0 and N >= 4) else 1
    G = N // pack
    PT = pack * T
    xp = x.reshape(G, pack, C, T).transpose(0, 2, 1, 3).reshape(G, C, PT)

    # Advisory cost estimate: this op is tiny/latency-bound inside a larger
    # model; the hint lets XLA overlap it with neighbors.
    flops = 2 * N * T * C * C * (1 + 3 * NB)
    bytes_accessed = (2 * N * C * T * 4            # input + output, f32
                      + int(w_all.size) * 2 + int(w0.size) * 2
                      + int(b_all.size) * 4 + int(b0.size) * 4)
    cost = pl.CostEstimate(flops=flops, transcendentals=0,
                           bytes_accessed=bytes_accessed)

    kernel = functools.partial(_mtca_fused_kernel, dils=dils, t_len=T)
    out = pl.pallas_call(
        kernel,
        out_shape=jax.ShapeDtypeStruct((G, C, PT), jnp.float32),
        grid=(G,),
        in_specs=[
            pl.BlockSpec((None, C, PT), lambda g: (g, 0, 0)),
            pl.BlockSpec((C, C), lambda g: (0, 0)),
            pl.BlockSpec((C, 1), lambda g: (0, 0)),
            pl.BlockSpec((3 * NB, C, C), lambda g: (0, 0, 0)),
            pl.BlockSpec((NB, C, 1), lambda g: (0, 0, 0)),
        ],
        out_specs=pl.BlockSpec((None, C, PT), lambda g: (g, 0, 0)),
        # Packed-batch axis is independent work -> "parallel" (shards across
        # the two TensorCores on v7x; harmless on v5e/v6e).
        compiler_params=pltpu.CompilerParams(
            dimension_semantics=("parallel",)),
        cost_estimate=cost,
    )(xp, w0, b0, w_all, b_all)

    return out.reshape(G, C, pack, T).transpose(0, 2, 1, 3).reshape(N, C, T)


# ----------------------------- parameter setup ------------------------------

def _init_bn(key, C):
    k1, k2, k3, k4 = jax.random.split(key, 4)
    return dict(
        gamma=1.0 + 0.1 * jax.random.normal(k1, (C,), jnp.float32),
        beta=0.1 * jax.random.normal(k2, (C,), jnp.float32),
        mean=0.1 * jax.random.normal(k3, (C,), jnp.float32),
        var=1.0 + 0.1 * jax.random.uniform(k4, (C,), jnp.float32),
    )


def init_mtca_params(key, dim, layer_num):
    keys = jax.random.split(key, 2 + layer_num)
    # initial Conv1d(dim, dim, k=1, bias=True)
    kw, kb = jax.random.split(keys[0])
    params = dict(
        conv_w=jax.random.normal(kw, (dim, dim), jnp.float32) / jnp.sqrt(dim),
        conv_b=(0.05 * jax.random.normal(kb, (dim,), jnp.float32))[:, None],
        layers=[],
    )
    for i in range(layer_num):
        layer = []
        for j, dil in enumerate((2 ** (i + 1), 3)):  # MPTC(2**(i+1)), MPTC(3)
            k1, k3, kb1, kb3, kbr = jax.random.split(
                jax.random.fold_in(keys[1 + i], j), 5)
            layer.append(dict(
                dil=dil,
                w1=jax.random.normal(k1, (dim, dim), jnp.float32) / jnp.sqrt(dim),
                w3=jax.random.normal(k3, (dim, dim, 3), jnp.float32) / jnp.sqrt(3 * dim),
                bn1=_init_bn(kb1, dim),
                bn3=_init_bn(kb3, dim),
                bnr=_init_bn(kbr, dim),
            ))
        params["layers"].append(layer)
    return params


# ----------------------------- pure-JAX reference ---------------------------

def _ref_mptc(x, p):
    dil = p["dil"]
    s1, sh1 = _bn_scale_shift(p["bn1"])
    s3, sh3 = _bn_scale_shift(p["bn3"])
    sr, shr = _bn_scale_shift(p["bnr"])
    y1 = jnp.einsum("oc,nct->not", p["w1"], x, precision=lax.Precision.HIGHEST)
    y1 = y1 * s1[None, :, None] + sh1[None, :, None]
    y3 = lax.conv_general_dilated(
        x, p["w3"], window_strides=(1,), padding=[(dil, dil)], rhs_dilation=(dil,),
        dimension_numbers=("NCH", "OIH", "NCH"), precision=lax.Precision.HIGHEST)
    y3 = y3 * s3[None, :, None] + sh3[None, :, None]
    res = x * sr[None, :, None] + shr[None, :, None]
    return jnp.maximum(y1 + y3 + res, 0.0)


def mtca_forward_ref(x, params):
    y = jnp.einsum("oc,nct->not", params["conv_w"], x,
                   precision=lax.Precision.HIGHEST) + params["conv_b"][None, :, :]
    x = jnp.maximum(y, 0.0)
    for layer in params["layers"]:
        for mp in layer:
            x = _ref_mptc(x, mp)
    return x


# ----------------------------------- main ------------------------------------

if __name__ == "__main__":
    # cfg.temporal_dim = 32 (channel dim of the Conv1d stack), cfg.mtca_layer_num = 2
    # N=4 exercises the 2-way lane packing while keeping 2 parallel grid steps.
    N, DIM, T = 4, 32, 128
    LAYER_NUM = 2

    root = jax.random.PRNGKey(0)
    kx, kp = jax.random.split(root)
    x = jax.random.normal(kx, (N, DIM, T), jnp.float32)
    params = init_mtca_params(kp, DIM, LAYER_NUM)

    out = jax.block_until_ready(mtca_forward(x, params))

    ref = mtca_forward_ref(x, params)
    assert out.shape == (N, DIM, T)
    # bf16 MXU operands (f32 accumulate) vs. a HIGHEST-precision f32 reference:
    # validate at 5% of the output's dynamic range.
    max_err = float(jnp.max(jnp.abs(out - ref)))
    scale = float(jnp.max(jnp.abs(ref)))
    assert max_err <= 5e-2 * max(scale, 1.0), (max_err, scale)

    print("KERNEL_OK")
</pallas_src>

<mosaic_0001>
module attributes {stable_mosaic.version = 11 : i64} {
  func.func @_mtca_fused_kernel(%arg0: i32, %arg1: memref<1x32x256xf32, #tpu.memory_space<vmem>>, %arg2: memref<32x32xbf16, #tpu.memory_space<vmem>>, %arg3: memref<32x1xf32, #tpu.memory_space<vmem>>, %arg4: memref<12x32x32xbf16, #tpu.memory_space<vmem>>, %arg5: memref<4x32x1xf32, #tpu.memory_space<vmem>>, %arg6: memref<1x32x256xf32, #tpu.memory_space<vmem>>) attributes {dimension_semantics = [#tpu.dimension_semantics<parallel>], iteration_bounds = array<i64: 2>, scalar_prefetch = 0 : i64, scratch_operands = 0 : i64, tpu.core_type = #tpu.core_type<tc>, window_params = [{transform_indices = @transform_0, window_bounds = array<i64: 1, 32, 256>}, {pipeline_mode = #tpu.pipeline_mode<synchronous>, transform_indices = @transform_1, window_bounds = array<i64: 32, 32>}, {pipeline_mode = #tpu.pipeline_mode<synchronous>, transform_indices = @transform_2, window_bounds = array<i64: 32, 1>}, {pipeline_mode = #tpu.pipeline_mode<synchronous>, transform_indices = @transform_3, window_bounds = array<i64: 12, 32, 32>}, {pipeline_mode = #tpu.pipeline_mode<synchronous>, transform_indices = @transform_4, window_bounds = array<i64: 4, 32, 1>}, {transform_indices = @transform_5, window_bounds = array<i64: 1, 32, 256>}]} {
    %c0 = arith.constant 0 : index
    %c0_0 = arith.constant 0 : index
    %c0_1 = arith.constant 0 : index
    %0 = vector.load %arg1[%c0, %c0_0, %c0_1] : memref<1x32x256xf32, #tpu.memory_space<vmem>>, vector<1x32x256xf32>
    %1 = vector.shape_cast %0 : vector<1x32x256xf32> to vector<32x256xf32>
    %2 = tpu.iota {dimensions = array<i32: 1>} : vector<32x256xi32>
    %c128_i32 = arith.constant 128 : i32
    %c0_i32 = arith.constant 0 : i32
    %3 = arith.cmpi eq, %c128_i32, %c0_i32 : i32
    %c1_i32 = arith.constant 1 : i32
    %4 = arith.select %3, %c1_i32, %c128_i32 : i32
    %5 = vector.broadcast %4 : i32 to vector<32x256xi32>
    %6 = arith.remsi %2, %5 : vector<32x256xi32>
    %c0_i32_2 = arith.constant 0 : i32
    %7 = vector.broadcast %c0_i32_2 : i32 to vector<32x256xi32>
    %8 = arith.cmpi ne, %6, %7 : vector<32x256xi32>
    %c0_i32_3 = arith.constant 0 : i32
    %9 = vector.broadcast %c0_i32_3 : i32 to vector<32x256xi32>
    %10 = arith.cmpi slt, %6, %9 : vector<32x256xi32>
    %c0_i32_4 = arith.constant 0 : i32
    %11 = arith.cmpi slt, %4, %c0_i32_4 : i32
    %12 = vector.broadcast %11 : i1 to vector<32x256xi1>
    %13 = vector.broadcast %12 : vector<32x256xi1> to vector<32x256xi1>
    %14 = arith.xori %10, %13 : vector<32x256xi1>
    %15 = arith.andi %14, %8 : vector<32x256xi1>
    %16 = vector.broadcast %4 : i32 to vector<32x256xi32>
    %17 = arith.addi %6, %16 : vector<32x256xi32>
    %18 = arith.select %15, %17, %6 : vector<32x256xi1>, vector<32x256xi32>
    %c2_i32 = arith.constant 2 : i32
    %19 = vector.broadcast %c2_i32 : i32 to vector<32x256xi32>
    %20 = arith.cmpi sge, %18, %19 : vector<32x256xi32>
    %c3_i32 = arith.constant 3 : i32
    %21 = vector.broadcast %c3_i32 : i32 to vector<32x256xi32>
    %22 = arith.cmpi sge, %18, %21 : vector<32x256xi32>
    %c4_i32 = arith.constant 4 : i32
    %23 = vector.broadcast %c4_i32 : i32 to vector<32x256xi32>
    %24 = arith.cmpi sge, %18, %23 : vector<32x256xi32>
    %c126_i32 = arith.constant 126 : i32
    %25 = vector.broadcast %c126_i32 : i32 to vector<32x256xi32>
    %26 = arith.cmpi slt, %18, %25 : vector<32x256xi32>
    %c125_i32 = arith.constant 125 : i32
    %27 = vector.broadcast %c125_i32 : i32 to vector<32x256xi32>
    %28 = arith.cmpi slt, %18, %27 : vector<32x256xi32>
    %c124_i32 = arith.constant 124 : i32
    %29 = vector.broadcast %c124_i32 : i32 to vector<32x256xi32>
    %30 = arith.cmpi slt, %18, %29 : vector<32x256xi32>
    %c0_5 = arith.constant 0 : index
    %c0_6 = arith.constant 0 : index
    %31 = vector.load %arg2[%c0_5, %c0_6] : memref<32x32xbf16, #tpu.memory_space<vmem>>, vector<32x32xbf16>
    %32 = arith.truncf %1 : vector<32x256xf32> to vector<32x256xbf16>
    %cst = arith.constant dense<0.000000e+00> : vector<32x256xf32>
    %33 = tpu.matmul %31, %32, %cst {dimension_numbers = #tpu.dot_dimension_numbers<[1], [0], [0], [1], [0, 0, 1, 1], [], []>} : vector<32x32xbf16>, vector<32x256xbf16>, vector<32x256xf32> -> vector<32x256xf32>
    %c0_7 = arith.constant 0 : index
    %c0_8 = arith.constant 0 : index
    %34 = vector.load %arg3[%c0_7, %c0_8] : memref<32x1xf32, #tpu.memory_space<vmem>>, vector<32x1xf32>
    %35 = vector.broadcast %34 : vector<32x1xf32> to vector<32x256xf32>
    %36 = arith.addf %33, %35 : vector<32x256xf32>
    %cst_9 = arith.constant 0.000000e+00 : f32
    %37 = vector.broadcast %cst_9 : f32 to vector<32x256xf32>
    %38 = arith.maximumf %36, %37 : vector<32x256xf32>
    %c2_i32_10 = arith.constant 2 : i32
    %39 = tpu.dynamic_rotate %38 by %c2_i32_10 dim 1 : vector<32x256xf32>, i32 -> vector<32x256xf32>
    %cst_11 = arith.constant 0.000000e+00 : f32
    %40 = vector.broadcast %cst_11 : f32 to vector<32x256xf32>
    %41 = arith.select %20, %39, %40 : vector<32x256xi1>, vector<32x256xf32>
    %c254_i32 = arith.constant 254 : i32
    %42 = tpu.dynamic_rotate %38 by %c254_i32 dim 1 : vector<32x256xf32>, i32 -> vector<32x256xf32>
    %cst_12 = arith.constant 0.000000e+00 : f32
    %43 = vector.broadcast %cst_12 : f32 to vector<32x256xf32>
    %44 = arith.select %26, %42, %43 : vector<32x256xi1>, vector<32x256xf32>
    %c1 = arith.constant 1 : index
    %c0_13 = arith.constant 0 : index
    %c0_14 = arith.constant 0 : index
    %45 = vector.load %arg4[%c1, %c0_13, %c0_14] : memref<12x32x32xbf16, #tpu.memory_space<vmem>>, vector<1x32x32xbf16>
    %46 = vector.shape_cast %45 : vector<1x32x32xbf16> to vector<32x32xbf16>
    %47 = arith.truncf %38 : vector<32x256xf32> to vector<32x256xbf16>
    %cst_15 = arith.constant dense<0.000000e+00> : vector<32x256xf32>
    %48 = tpu.matmul %46, %47, %cst_15 {dimension_numbers = #tpu.dot_dimension_numbers<[1], [0], [0], [1], [0, 0, 1, 1], [], []>} : vector<32x32xbf16>, vector<32x256xbf16>, vector<32x256xf32> -> vector<32x256xf32>
    %c0_16 = arith.constant 0 : index
    %c0_17 = arith.constant 0 : index
    %c0_18 = arith.constant 0 : index
    %49 = vector.load %arg4[%c0_16, %c0_17, %c0_18] : memref<12x32x32xbf16, #tpu.memory_space<vmem>>, vector<1x32x32xbf16>
    %50 = vector.shape_cast %49 : vector<1x32x32xbf16> to vector<32x32xbf16>
    %51 = arith.truncf %41 : vector<32x256xf32> to vector<32x256xbf16>
    %cst_19 = arith.constant dense<0.000000e+00> : vector<32x256xf32>
    %52 = tpu.matmul %50, %51, %cst_19 {dimension_numbers = #tpu.dot_dimension_numbers<[1], [0], [0], [1], [0, 0, 1, 1], [], []>} : vector<32x32xbf16>, vector<32x256xbf16>, vector<32x256xf32> -> vector<32x256xf32>
    %53 = arith.addf %48, %52 : vector<32x256xf32>
    %c2 = arith.constant 2 : index
    %c0_20 = arith.constant 0 : index
    %c0_21 = arith.constant 0 : index
    %54 = vector.load %arg4[%c2, %c0_20, %c0_21] : memref<12x32x32xbf16, #tpu.memory_space<vmem>>, vector<1x32x32xbf16>
    %55 = vector.shape_cast %54 : vector<1x32x32xbf16> to vector<32x32xbf16>
    %56 = arith.truncf %44 : vector<32x256xf32> to vector<32x256xbf16>
    %cst_22 = arith.constant dense<0.000000e+00> : vector<32x256xf32>
    %57 = tpu.matmul %55, %56, %cst_22 {dimension_numbers = #tpu.dot_dimension_numbers<[1], [0], [0], [1], [0, 0, 1, 1], [], []>} : vector<32x32xbf16>, vector<32x256xbf16>, vector<32x256xf32> -> vector<32x256xf32>
    %58 = arith.addf %53, %57 : vector<32x256xf32>
    %c0_23 = arith.constant 0 : index
    %c0_24 = arith.constant 0 : index
    %c0_25 = arith.constant 0 : index
    %59 = vector.load %arg5[%c0_23, %c0_24, %c0_25] : memref<4x32x1xf32, #tpu.memory_space<vmem>>, vector<1x32x1xf32>
    %60 = vector.shape_cast %59 : vector<1x32x1xf32> to vector<32x1xf32>
    %61 = vector.broadcast %60 : vector<32x1xf32> to vector<32x256xf32>
    %62 = arith.addf %58, %61 : vector<32x256xf32>
    %cst_26 = arith.constant 0.000000e+00 : f32
    %63 = vector.broadcast %cst_26 : f32 to vector<32x256xf32>
    %64 = arith.maximumf %62, %63 : vector<32x256xf32>
    %c3_i32_27 = arith.constant 3 : i32
    %65 = tpu.dynamic_rotate %64 by %c3_i32_27 dim 1 : vector<32x256xf32>, i32 -> vector<32x256xf32>
    %cst_28 = arith.constant 0.000000e+00 : f32
    %66 = vector.broadcast %cst_28 : f32 to vector<32x256xf32>
    %67 = arith.select %22, %65, %66 : vector<32x256xi1>, vector<32x256xf32>
    %c253_i32 = arith.constant 253 : i32
    %68 = tpu.dynamic_rotate %64 by %c253_i32 dim 1 : vector<32x256xf32>, i32 -> vector<32x256xf32>
    %cst_29 = arith.constant 0.000000e+00 : f32
    %69 = vector.broadcast %cst_29 : f32 to vector<32x256xf32>
    %70 = arith.select %28, %68, %69 : vector<32x256xi1>, vector<32x256xf32>
    %c4 = arith.constant 4 : index
    %c0_30 = arith.constant 0 : index
    %c0_31 = arith.constant 0 : index
    %71 = vector.load %arg4[%c4, %c0_30, %c0_31] : memref<12x32x32xbf16, #tpu.memory_space<vmem>>, vector<1x32x32xbf16>
    %72 = vector.shape_cast %71 : vector<1x32x32xbf16> to vector<32x32xbf16>
    %73 = arith.truncf %64 : vector<32x256xf32> to vector<32x256xbf16>
    %cst_32 = arith.constant dense<0.000000e+00> : vector<32x256xf32>
    %74 = tpu.matmul %72, %73, %cst_32 {dimension_numbers = #tpu.dot_dimension_numbers<[1], [0], [0], [1], [0, 0, 1, 1], [], []>} : vector<32x32xbf16>, vector<32x256xbf16>, vector<32x256xf32> -> vector<32x256xf32>
    %c3 = arith.constant 3 : index
    %c0_33 = arith.constant 0 : index
    %c0_34 = arith.constant 0 : index
    %75 = vector.load %arg4[%c3, %c0_33, %c0_34] : memref<12x32x32xbf16, #tpu.memory_space<vmem>>, vector<1x32x32xbf16>
    %76 = vector.shape_cast %75 : vector<1x32x32xbf16> to vector<32x32xbf16>
    %77 = arith.truncf %67 : vector<32x256xf32> to vector<32x256xbf16>
    %cst_35 = arith.constant dense<0.000000e+00> : vector<32x256xf32>
    %78 = tpu.matmul %76, %77, %cst_35 {dimension_numbers = #tpu.dot_dimension_numbers<[1], [0], [0], [1], [0, 0, 1, 1], [], []>} : vector<32x32xbf16>, vector<32x256xbf16>, vector<32x256xf32> -> vector<32x256xf32>
    %79 = arith.addf %74, %78 : vector<32x256xf32>
    %c5 = arith.constant 5 : index
    %c0_36 = arith.constant 0 : index
    %c0_37 = arith.constant 0 : index
    %80 = vector.load %arg4[%c5, %c0_36, %c0_37] : memref<12x32x32xbf16, #tpu.memory_space<vmem>>, vector<1x32x32xbf16>
    %81 = vector.shape_cast %80 : vector<1x32x32xbf16> to vector<32x32xbf16>
    %82 = arith.truncf %70 : vector<32x256xf32> to vector<32x256xbf16>
    %cst_38 = arith.constant dense<0.000000e+00> : vector<32x256xf32>
    %83 = tpu.matmul %81, %82, %cst_38 {dimension_numbers = #tpu.dot_dimension_numbers<[1], [0], [0], [1], [0, 0, 1, 1], [], []>} : vector<32x32xbf16>, vector<32x256xbf16>, vector<32x256xf32> -> vector<32x256xf32>
    %84 = arith.addf %79, %83 : vector<32x256xf32>
    %c1_39 = arith.constant 1 : index
    %c0_40 = arith.constant 0 : index
    %c0_41 = arith.constant 0 : index
    %85 = vector.load %arg5[%c1_39, %c0_40, %c0_41] : memref<4x32x1xf32, #tpu.memory_space<vmem>>, vector<1x32x1xf32>
    %86 = vector.shape_cast %85 : vector<1x32x1xf32> to vector<32x1xf32>
    %87 = vector.broadcast %86 : vector<32x1xf32> to vector<32x256xf32>
    %88 = arith.addf %84, %87 : vector<32x256xf32>
    %cst_42 = arith.constant 0.000000e+00 : f32
    %89 = vector.broadcast %cst_42 : f32 to vector<32x256xf32>
    %90 = arith.maximumf %88, %89 : vector<32x256xf32>
    %c4_i32_43 = arith.constant 4 : i32
    %91 = tpu.dynamic_rotate %90 by %c4_i32_43 dim 1 : vector<32x256xf32>, i32 -> vector<32x256xf32>
    %cst_44 = arith.constant 0.000000e+00 : f32
    %92 = vector.broadcast %cst_44 : f32 to vector<32x256xf32>
    %93 = arith.select %24, %91, %92 : vector<32x256xi1>, vector<32x256xf32>
    %c252_i32 = arith.constant 252 : i32
    %94 = tpu.dynamic_rotate %90 by %c252_i32 dim 1 : vector<32x256xf32>, i32 -> vector<32x256xf32>
    %cst_45 = arith.constant 0.000000e+00 : f32
    %95 = vector.broadcast %cst_45 : f32 to vector<32x256xf32>
    %96 = arith.select %30, %94, %95 : vector<32x256xi1>, vector<32x256xf32>
    %c7 = arith.constant 7 : index
    %c0_46 = arith.constant 0 : index
    %c0_47 = arith.constant 0 : index
    %97 = vector.load %arg4[%c7, %c0_46, %c0_47] : memref<12x32x32xbf16, #tpu.memory_space<vmem>>, vector<1x32x32xbf16>
    %98 = vector.shape_cast %97 : vector<1x32x32xbf16> to vector<32x32xbf16>
    %99 = arith.truncf %90 : vector<32x256xf32> to vector<32x256xbf16>
    %cst_48 = arith.constant dense<0.000000e+00> : vector<32x256xf32>
    %100 = tpu.matmul %98, %99, %cst_48 {dimension_numbers = #tpu.dot_dimension_numbers<[1], [0], [0], [1], [0, 0, 1, 1], [], []>} : vector<32x32xbf16>, vector<32x256xbf16>, vector<32x256xf32> -> vector<32x256xf32>
    %c6 = arith.constant 6 : index
    %c0_49 = arith.constant 0 : index
    %c0_50 = arith.constant 0 : index
    %101 = vector.load %arg4[%c6, %c0_49, %c0_50] : memref<12x32x32xbf16, #tpu.memory_space<vmem>>, vector<1x32x32xbf16>
    %102 = vector.shape_cast %101 : vector<1x32x32xbf16> to vector<32x32xbf16>
    %103 = arith.truncf %93 : vector<32x256xf32> to vector<32x256xbf16>
    %cst_51 = arith.constant dense<0.000000e+00> : vector<32x256xf32>
    %104 = tpu.matmul %102, %103, %cst_51 {dimension_numbers = #tpu.dot_dimension_numbers<[1], [0], [0], [1], [0, 0, 1, 1], [], []>} : vector<32x32xbf16>, vector<32x256xbf16>, vector<32x256xf32> -> vector<32x256xf32>
    %105 = arith.addf %100, %104 : vector<32x256xf32>
    %c8 = arith.constant 8 : index
    %c0_52 = arith.constant 0 : index
    %c0_53 = arith.constant 0 : index
    %106 = vector.load %arg4[%c8, %c0_52, %c0_53] : memref<12x32x32xbf16, #tpu.memory_space<vmem>>, vector<1x32x32xbf16>
    %107 = vector.shape_cast %106 : vector<1x32x32xbf16> to vector<32x32xbf16>
    %108 = arith.truncf %96 : vector<32x256xf32> to vector<32x256xbf16>
    %cst_54 = arith.constant dense<0.000000e+00> : vector<32x256xf32>
    %109 = tpu.matmul %107, %108, %cst_54 {dimension_numbers = #tpu.dot_dimension_numbers<[1], [0], [0], [1], [0, 0, 1, 1], [], []>} : vector<32x32xbf16>, vector<32x256xbf16>, vector<32x256xf32> -> vector<32x256xf32>
    %110 = arith.addf %105, %109 : vector<32x256xf32>
    %c2_55 = arith.constant 2 : index
    %c0_56 = arith.constant 0 : index
    %c0_57 = arith.constant 0 : index
    %111 = vector.load %arg5[%c2_55, %c0_56, %c0_57] : memref<4x32x1xf32, #tpu.memory_space<vmem>>, vector<1x32x1xf32>
    %112 = vector.shape_cast %111 : vector<1x32x1xf32> to vector<32x1xf32>
    %113 = vector.broadcast %112 : vector<32x1xf32> to vector<32x256xf32>
    %114 = arith.addf %110, %113 : vector<32x256xf32>
    %cst_58 = arith.constant 0.000000e+00 : f32
    %115 = vector.broadcast %cst_58 : f32 to vector<32x256xf32>
    %116 = arith.maximumf %114, %115 : vector<32x256xf32>
    %c3_i32_59 = arith.constant 3 : i32
    %117 = tpu.dynamic_rotate %116 by %c3_i32_59 dim 1 : vector<32x256xf32>, i32 -> vector<32x256xf32>
    %cst_60 = arith.constant 0.000000e+00 : f32
    %118 = vector.broadcast %cst_60 : f32 to vector<32x256xf32>
    %119 = arith.select %22, %117, %118 : vector<32x256xi1>, vector<32x256xf32>
    %c253_i32_61 = arith.constant 253 : i32
    %120 = tpu.dynamic_rotate %116 by %c253_i32_61 dim 1 : vector<32x256xf32>, i32 -> vector<32x256xf32>
    %cst_62 = arith.constant 0.000000e+00 : f32
    %121 = vector.broadcast %cst_62 : f32 to vector<32x256xf32>
    %122 = arith.select %28, %120, %121 : vector<32x256xi1>, vector<32x256xf32>
    %c10 = arith.constant 10 : index
    %c0_63 = arith.constant 0 : index
    %c0_64 = arith.constant 0 : index
    %123 = vector.load %arg4[%c10, %c0_63, %c0_64] : memref<12x32x32xbf16, #tpu.memory_space<vmem>>, vector<1x32x32xbf16>
    %124 = vector.shape_cast %123 : vector<1x32x32xbf16> to vector<32x32xbf16>
    %125 = arith.truncf %116 : vector<32x256xf32> to vector<32x256xbf16>
    %cst_65 = arith.constant dense<0.000000e+00> : vector<32x256xf32>
    %126 = tpu.matmul %124, %125, %cst_65 {dimension_numbers = #tpu.dot_dimension_numbers<[1], [0], [0], [1], [0, 0, 1, 1], [], []>} : vector<32x32xbf16>, vector<32x256xbf16>, vector<32x256xf32> -> vector<32x256xf32>
    %c9 = arith.constant 9 : index
    %c0_66 = arith.constant 0 : index
    %c0_67 = arith.constant 0 : index
    %127 = vector.load %arg4[%c9, %c0_66, %c0_67] : memref<12x32x32xbf16, #tpu.memory_space<vmem>>, vector<1x32x32xbf16>
    %128 = vector.shape_cast %127 : vector<1x32x32xbf16> to vector<32x32xbf16>
    %129 = arith.truncf %119 : vector<32x256xf32> to vector<32x256xbf16>
    %cst_68 = arith.constant dense<0.000000e+00> : vector<32x256xf32>
    %130 = tpu.matmul %128, %129, %cst_68 {dimension_numbers = #tpu.dot_dimension_numbers<[1], [0], [0], [1], [0, 0, 1, 1], [], []>} : vector<32x32xbf16>, vector<32x256xbf16>, vector<32x256xf32> -> vector<32x256xf32>
    %131 = arith.addf %126, %130 : vector<32x256xf32>
    %c11 = arith.constant 11 : index
    %c0_69 = arith.constant 0 : index
    %c0_70 = arith.constant 0 : index
    %132 = vector.load %arg4[%c11, %c0_69, %c0_70] : memref<12x32x32xbf16, #tpu.memory_space<vmem>>, vector<1x32x32xbf16>
    %133 = vector.shape_cast %132 : vector<1x32x32xbf16> to vector<32x32xbf16>
    %134 = arith.truncf %122 : vector<32x256xf32> to vector<32x256xbf16>
    %cst_71 = arith.constant dense<0.000000e+00> : vector<32x256xf32>
    %135 = tpu.matmul %133, %134, %cst_71 {dimension_numbers = #tpu.dot_dimension_numbers<[1], [0], [0], [1], [0, 0, 1, 1], [], []>} : vector<32x32xbf16>, vector<32x256xbf16>, vector<32x256xf32> -> vector<32x256xf32>
    %136 = arith.addf %131, %135 : vector<32x256xf32>
    %c3_72 = arith.constant 3 : index
    %c0_73 = arith.constant 0 : index
    %c0_74 = arith.constant 0 : index
    %137 = vector.load %arg5[%c3_72, %c0_73, %c0_74] : memref<4x32x1xf32, #tpu.memory_space<vmem>>, vector<1x32x1xf32>
    %138 = vector.shape_cast %137 : vector<1x32x1xf32> to vector<32x1xf32>
    %139 = vector.broadcast %138 : vector<32x1xf32> to vector<32x256xf32>
    %140 = arith.addf %136, %139 : vector<32x256xf32>
    %cst_75 = arith.constant 0.000000e+00 : f32
    %141 = vector.broadcast %cst_75 : f32 to vector<32x256xf32>
    %142 = arith.maximumf %140, %141 : vector<32x256xf32>
    %c0_76 = arith.constant 0 : index
    %c0_77 = arith.constant 0 : index
    %c0_78 = arith.constant 0 : index
    %143 = vector.load %arg6[%c0_76, %c0_77, %c0_78] : memref<1x32x256xf32, #tpu.memory_space<vmem>>, vector<1x32x256xf32>
    %144 = vector.shape_cast %143 : vector<1x32x256xf32> to vector<32x256xf32>
    %145 = vector.shape_cast %142 : vector<32x256xf32> to vector<1x32x256xf32>
    tpu.vector_store %arg6[%c0_76, %c0_77, %c0_78], %145 {strides = array<i32>} : memref<1x32x256xf32, #tpu.memory_space<vmem>>, vector<1x32x256xf32>,
    return
  }
  func.func @transform_0(%arg0: i32) -> (i32, i32, i32) {
    %c0_i32 = arith.constant 0 : i32
    %c0_i32_0 = arith.constant 0 : i32
    %c0_i32_1 = arith.constant 0 : i32
    return %arg0, %c0_i32, %c0_i32_0 : i32, i32, i32
  }
  func.func @transform_1(%arg0: i32) -> (i32, i32) {
    %c0_i32 = arith.constant 0 : i32
    %c0_i32_0 = arith.constant 0 : i32
    %c0_i32_1 = arith.constant 0 : i32
    return %c0_i32, %c0_i32_0 : i32, i32
  }
  func.func @transform_2(%arg0: i32) -> (i32, i32) {
    %c0_i32 = arith.constant 0 : i32
    %c0_i32_0 = arith.constant 0 : i32
    %c0_i32_1 = arith.constant 0 : i32
    return %c0_i32, %c0_i32_0 : i32, i32
  }
  func.func @transform_3(%arg0: i32) -> (i32, i32, i32) {
    %c0_i32 = arith.constant 0 : i32
    %c0_i32_0 = arith.constant 0 : i32
    %c0_i32_1 = arith.constant 0 : i32
    %c0_i32_2 = arith.constant 0 : i32
    return %c0_i32, %c0_i32_0, %c0_i32_1 : i32, i32, i32
  }
  func.func @transform_4(%arg0: i32) -> (i32, i32, i32) {
    %c0_i32 = arith.constant 0 : i32
    %c0_i32_0 = arith.constant 0 : i32
    %c0_i32_1 = arith.constant 0 : i32
    %c0_i32_2 = arith.constant 0 : i32
    return %c0_i32, %c0_i32_0, %c0_i32_1 : i32, i32, i32
  }
  func.func @transform_5(%arg0: i32) -> (i32, i32, i32) {
    %c0_i32 = arith.constant 0 : i32
    %c0_i32_0 = arith.constant 0 : i32
    %c0_i32_1 = arith.constant 0 : i32
    return %arg0, %c0_i32, %c0_i32_0 : i32, i32, i32
  }
}

</mosaic_0001>

<bundles_post_ra>
// kernel: tpu_custom_call.1
= control target key start
LH: loop header
LB: loop body
LE: loop exit
PB: predicated region body
PF: predicated region fallthrough
CT: control target
= control target key end

     0   :  { %10 = vsyncpa [#allocation3], 0  ;;  %s2988_s0 = inlined_call_operand.vmem [shape: f32[2,32,256], index: 0, kind: input, shape index: {}]   ;;  %s2989_s1 = inlined_call_operand.vmem [shape: bf16[32,32], index: 1, kind: input, shape index: {}]   ;;  %s2990_s2 = inlined_call_operand.vmem [shape: f32[32,1], index: 2, kind: input, shape index: {}]   ;;  %s2991_s3 = inlined_call_operand.hbm [shape: bf16[12,32,32], index: 3, kind: input, shape index: {}]   ;;  %s2992_s4 = inlined_call_operand.vmem [shape: f32[4,32,1], index: 4, kind: input, shape index: {}]   ;;  %s2993_s5 = inlined_call_operand.hbm [shape: f32[2,32,256], index: 5, kind: output, shape index: {}]  }
   0x1   :  { %11 = vsyncpa [#allocation4], 0 }
   0x2   :  { %13 = vsyncpa [#allocation4 + $0x1], 0  ;;  %s2448_s18 = smov 0   ;;  %s2450_s19 = smov 0  }
   0x3   :  { %s2452_s20 = smov 0   ;;  %s2454_s21 = smov 0  }
   0x4 LB: > { %s2469_s22 = sadd.s32 4294967295, %s2403_s21   ;;  %s1884_s23 = sadd.s32 4294967294, %s2403_s21   ;;  %s2403_s21 = sphi %s2454_s21, %s3025_s21   ;;  %s2399_s20 = sphi %s2452_s20, %s3024_s20   ;;  %s2395_s19 = sphi %s2450_s19, %s3023_s19   ;;  %s2391_s18 = sphi %s2448_s18, %s3022_s18  }
   0x5   : > { %s2473_s24 = sadd.s32 1, %s2403_s21   ;;  %s136_s25 = sadd.s32 1, %s2399_s20 }
   0x6   : > { %s133_s26 = ssub.s32 %s2403_s21, %s2473_s24  ;;  %p146_p0 = scmp.ne.s32.totalorder %s2399_s20, %s2395_s19 }
   0x7   : > { %p134_p1 = scmp.eq.s32.totalorder %s133_s26, 0  ;;  %p147_p2 = scmp.eq.s32.totalorder %s2469_s22, 1 }
   0x8   : > { %p152_p3 = scmp.ne.s32.totalorder %s2395_s19, %s2391_s18  ;;  %p153_p4 = scmp.eq.s32.totalorder %s1884_s23, 1 }
   0x9   : > { %s2484_s27 = scalar_select %p134_p1, %s2399_s20, %s136_s25  }
   0xa   : > { %p2486_p5 = por %p147_p2, %p146_p0  ;;  %p2490_p6 = por %p153_p4, %p152_p3 }
   0xb   : > { %p1885_p7 = scmp.ge.s32.totalorder %s2403_s21, 1  ;;  %p160_p8 = scmp.lt.s32.totalorder %s2403_s21, 3 }
   0xc   : > { %s2995_s29 = scalar_select %p2490_p6, 1, 0 }
   0xd   : > { %p2078_p9 = scmp.eq.s32.totalorder %s2469_s22, 0  ;;  %p2497_p10 = pnand %p1885_p7, %p160_p8 }
   0xe   : > { %s2405_s6 = smov [#allocation2]  }
   0xf   : > { %s178_s7 = sshll.u32 %s2405_s6, 4  ;;  %p2070_p11 = pneg %p2497_p10  ;;  %s179_s7 = int_to_ptr.vmem [resolvable:$true] %s178_s7 }
  0x10   : > { %s2324_s8 = scalar_lea.vmem %s179_s7, 3072  ;;  %p2332_p3 = scmp.lt.s32.totalorder %s179_s7, %s179_s7 }
  0x11   : > { %p2071_p12 = pnand %p2078_p9, %p2070_p11  ;;  %p2325_p0 = scmp.ne.s32.totalorder %s179_s7, %s2324_s8 }
  0x12   : > { %p2333_p4 = scmp.lt.s32.totalorder %s2324_s8, %s2324_s8 }
  0x13   : > { %p2315_p13 = pneg %p2071_p12 }
  0x14   : > { %p2334_p6 = por %p2333_p4, %p2332_p3 }
  0x15   : > { %p2327_p1 = pnand %p2325_p0, %p2315_p13 }
  0x17   : > { %p2328_p2 = pneg %p2327_p1 }
  0x19   : > { %p2335_p7 = pnand %p2334_p6, %p2328_p2 }
  0x1b   : > { %2338 = shalt.err (!%p2335_p7)
}
  0x1c   : > { %s2406_s9 = smov 64   ;;  %s2407_s10 = smov 4  }
  0x1d   : > { %2073 = dma.hbm_to_vmem [thread:$0]  (!%p2071_p12), %s2991_s3, 3072, %s179_s7, [#allocation3], %s2406_s9, %s2406_s9, %s2407_s10  }
  0x1e   : > { %205 = sbr.rel (%p2497_p10) target bundleno = 1706 (0x6aa), region = 40 }
  0x23   : > { %2382 = dma.done.wait (%p2078_p9), [#allocation3], 3072  }
  0x24   : > { %2384 = vsyncadd (%p2078_p9), [#allocation3], 4294964224  ;;  %p233_p8 = scmp.lt.s32.totalorder %s2469_s22, 1  ;;  %v2408_v0 = vmov 0   ;;  %v296_v13 = vld [vmem:[%s2990_s2 + $0x10] sm:$0xff]  ;;  %v2287_v14 = vld [vmem:[%s2989_s1] sm:$0xff]   ;;  %v247_v61 = vlaneseq }
  0x25   : > { %367 = vmatprep.mubr.bf16.mxu0 %v2408_v0  ;;  %377 = vmatprep.mubr.bf16.mxu1 %v2408_v0  ;;  %vm328_vm0 = vcmask 261120   ;;  %v2288_v15 = vld [vmem:[%s2989_s1 + $0x8] sm:$0xff]   ;;  %v294_v16 = vld [vmem:[%s2990_s2] sm:$0xff]  ;;  %v297_v17 = vld [vmem:[%s2990_s2 + $0x18] sm:$0xff]  ;;  %s2410_s15 = smov 126   ;;  %s2411_s8 = smov 3  }
  0x26   : > { %s234_s13 = scalar_select %p233_p8, %s2469_s22, 1  ;;  %2125 = vset.pattern.permute.xlu0 %v2408_v0  ;;  %2126 = vset.pattern.permute.xlu1 %v2408_v0  ;;  %v295_v18 = vld [vmem:[%s2990_s2 + $0x8] sm:$0xff]  ;;  %v2290_v55 = vld [vmem:[#allocation2 + $0x10] sm:$0xff]   ;;  %v2292_v57 = vld [vmem:[#allocation2 + $0x18] sm:$0xff]   ;;  %v2561_v62 = vand.u32 127, %v247_v61 }
  0x27   : > { %310 = vperm.xlu0 %2125, %v296_v13   ;;  %300 = vperm.xlu1 %2126, %v294_v16   ;;  %v705_v56 = vld [vmem:[%s2992_s4 + $0x10] sm:$0xff]  ;;  %v706_v58 = vld [vmem:[%s2992_s4 + $0x18] sm:$0xff]  ;;  %v703_v59 = vld [vmem:[%s2992_s4] sm:$0xff]  ;;  %s2412_s9 = smov 125   ;;  %s2413_s23 = smov 4  }
  0x28   : > { %s2058_s14 = sshll.u32 %s234_s13, 6  ;;  %v704_v60 = vld [vmem:[%s2992_s4 + $0x8] sm:$0xff]  ;;  %v249_v63 = vadd.s32 128, %v2561_v62  ;;  %vm412_vm1 = vcmp.lt.s32.totalorder %v2561_v62, 2  ;;  %vm274_vm3 = vcmp.ge.s32.totalorder %v2561_v62, 2  ;;  %vm280_vm6 = vcmp.lt.s32.totalorder %v2561_v62, 126 }
  0x29   : > { %s237_s17 = scalar_lea.vmem %s2988_s0, %s2058_s14  ;;  %s2409_s14 = smov 2   ;;  %vm2581_vm5 = vmpackc.low %vm274_vm3, %vm274_vm3  ;;  %vm759_vm10 = vcmp.lt.s32.totalorder %v2561_v62, 3  ;;  %vm276_vm12 = vcmp.ge.s32.totalorder %v2561_v62, 3  ;;  %vm282_vm15 = vcmp.lt.s32.totalorder %v2561_v62, 125 }
  0x2a   : > { %v244_v1 = vld [vmem:[%s237_s17 + $0x28] sm:$0xff]  ;;  %v246_v2 = vld [vmem:[%s237_s17 + $0x38] sm:$0xff]  ;;  %v243_v3 = vld [vmem:[%s237_s17 + $0x20] sm:$0xff]  ;;  %s2414_s25 = smov 124   ;;  %s2059_s10 = sshll.u32 %s2469_s22, 10 }
  0x2b   : > { %v293_v4 = vpack.c.bf16 %v246_v2, %v244_v1  ;;  %v245_v5 = vld [vmem:[%s237_s17 + $0x30] sm:$0xff]  ;;  %v240_v6 = vld [vmem:[%s237_s17 + $0x8] sm:$0xff]  ;;  %v242_v7 = vld [vmem:[%s237_s17 + $0x18] sm:$0xff]  ;;  %315 = vperm.xlu0 %2125, %v297_v17   ;;  %305 = vperm.xlu1 %2126, %v295_v18   ;;  %v2564_v1 = vand.u32 127, %v249_v63  ;;  %s2943_s13 = scalar_lea.hbm %s2993_s5, %s2059_s10 }
  0x2c   : > { %v292_v8 = vpack.c.bf16 %v245_v5, %v243_v3  ;;  %v291_v9 = vpack.c.bf16 %v242_v7, %v240_v6  ;;  %v239_v10 = vld [vmem:[%s237_s17] sm:$0xff]  ;;  %v241_v11 = vld [vmem:[%s237_s17 + $0x10] sm:$0xff]  ;;  %vm2618_vm9 = vmpackc.low %vm280_vm6, %vm280_vm6 }
  0x2d   : > { %347 = vmatprep.subr.bf16.mxu0 %v293_v4  ;;  %2060 = vmatprep.subr.bf16.mxu1 %v293_v4  ;;  %v290_v12 = vpack.c.bf16 %v241_v11, %v239_v10  ;;  %vm275_vm2 = vcmp.ge.s32.totalorder %v2564_v1, 2  ;;  %vm281_vm7 = vcmp.lt.s32.totalorder %v2564_v1, 126  ;;  %vm277_vm11 = vcmp.ge.s32.totalorder %v2564_v1, 3  ;;  %vm2685_vm14 = vmpackc.low %vm276_vm12, %vm276_vm12 }
  0x2e   : > { %348 = vmatpush1.bf16.msra.mxu0 %v292_v8  ;;  %2062 = vmatpush1.bf16.msra.mxu1 %v292_v8  ;;  %vm2577_vm4 = vmpackc.low %vm275_vm2, %vm275_vm2 }
  0x2f   : > { %349 = vmatprep.subr.bf16.mxu0 %v291_v9  ;;  %2061 = vmatprep.subr.bf16.mxu1 %v291_v9  ;;  %vm2611_vm8 = vmpackc.low %vm281_vm7, %vm281_vm7 }
  0x30   : > { %vm2681_vm13 = vmpackc.low %vm277_vm11, %vm277_vm11  ;;  %vm285_vm11 = vcmp.lt.s32.totalorder %v2564_v1, 124 }
  0x31   : > { %vm2722_vm3 = vmpackc.low %vm282_vm15, %vm282_vm15 }
  0x32   : > { %350 = vmatpush1.bf16.msra.mxu0 %v290_v12  ;;  %2063 = vmatpush1.bf16.msra.mxu1 %v290_v12  ;;  %vm2811_vm12 = vmpackc.low %vm285_vm11, %vm285_vm11 }
  0x35   : > { %1895 = vmatmul.mubr.msk.bf16.vlgmr.msra.gmra.mxu0 %vm328_vm0, %v2287_v14  ;;  %1896 = vmatmul.mubr.msk.bf16.vlgmr.msra.gmra.mxu1 %vm328_vm0, %v2288_v15 }
  0x36   : > { %527 = vmatprep.mubr.bf16.mxu1 %v2408_v0  ;;  %596 = vmatprep.mubr.bf16.mxu0 %v2408_v0 }
  0xa2   : > { %v311_v19 = vpop.permute.xlu0 %310  ;;  %v301_v20 = vpop.permute.xlu1 %300 }
  0xa6   : > { %v316_v25 = vpop.permute.xlu0 %315  ;;  %v306_v26 = vpop.permute.xlu1 %305 }
  0xf5   : > { %v369_v21 = vpop.f32.mrf.mxu0  ;;  %v379_v22 = vpop.f32.mrf.mxu1 }
  0xf6   : > { %v380_v27 = vadd.f32 %v379_v22, %v311_v19  ;;  %v370_v32 = vadd.f32 %v369_v21, %v301_v20 }
  0xf7   : > { %v371_v23 = vpop.f32.mrf.mxu0  ;;  %v381_v24 = vpop.f32.mrf.mxu1 }
  0xf8   : > { %v382_v30 = vadd.f32 %v381_v24, %v311_v19  ;;  %v372_v36 = vadd.f32 %v371_v23, %v301_v20  ;;  %v392_v40 = vmax.f32 %v380_v27, 0.0  ;;  %v388_v44 = vmax.f32 %v370_v32, 0.0 }
  0xf9   : > { %v373_v28 = vpop.f32.mrf.mxu0  ;;  %v383_v29 = vpop.f32.mrf.mxu1 }
  0xfa   : > { %v384_v31 = vadd.f32 %v383_v29, %v316_v25  ;;  %v374_v33 = vadd.f32 %v373_v28, %v306_v26  ;;  %v393_v41 = vmax.f32 %v382_v30, 0.0  ;;  %v389_v47 = vmax.f32 %v372_v36, 0.0 }
  0xfb   : > { %v375_v34 = vpop.f32.mrf.mxu0  ;;  %v385_v35 = vpop.f32.mrf.mxu1 }
  0xfc   : > { %v394_v37 = vmax.f32 %v384_v31, 0.0  ;;  %v376_v38 = vadd.f32 %v375_v34, %v306_v26  ;;  %v386_v39 = vadd.f32 %v385_v35, %v316_v25  ;;  %v390_v45 = vmax.f32 %v374_v33, 0.0  ;;  %v2289_v34 = vld [vmem:[#allocation2] sm:$0xff]  }
  0xfe   : > { %v391_v42 = vmax.f32 %v376_v38, 0.0  ;;  %v395_v43 = vmax.f32 %v386_v39, 0.0  ;;  %v2127_v46 = vpack.i.bf16 %v394_v37, %v392_v40  ;;  %v469_v50 = vpack.c.bf16 %v394_v37, %v392_v40 }
  0xff   : > { %v2132_v52 = vpack.i.bf16 %v390_v45, %v388_v44  ;;  %v467_v54 = vpack.c.bf16 %v390_v45, %v388_v44 }
 0x100   : > { %v2137_v48 = vpack.i.bf16 %v395_v43, %v393_v41  ;;  %v470_v49 = vpack.c.bf16 %v395_v43, %v393_v41  ;;  %2128 = vrot.lane.b32.xlu0 %v2127_v46, %s2409_s14  ;;  %v468_v51 = vpack.c.bf16 %v391_v42, %v389_v47  ;;  %v2142_v53 = vpack.i.bf16 %v391_v42, %v389_v47 }
 0x102   : > { %2138 = vrot.lane.b32.xlu1 %v2137_v48, %s2409_s14  ;;  %576 = vmatprep.subr.bf16.mxu0 %v470_v49 }
 0x103   : > { %577 = vmatpush1.bf16.msra.mxu0 %v469_v50 }
 0x104   : > { %578 = vmatprep.subr.bf16.mxu0 %v468_v51  ;;  %2133 = vrot.lane.b32.xlu0 %v2132_v52, %s2409_s14 }
 0x106   : > { %2143 = vrot.lane.b32.xlu1 %v2142_v53, %s2409_s14 }
 0x107   : > { %579 = vmatpush1.bf16.msra.mxu0 %v467_v54 }
 0x108   : > { %2148 = vrot.lane.b32.xlu0 %v2127_v46, %s2410_s15 }
 0x10a   : > { %2158 = vrot.lane.b32.xlu1 %v2137_v48, %s2410_s15  ;;  %1915 = vmatmul.mubr.msk.bf16.vlgmr.msra.gmra.mxu0 %vm328_vm0, %v2290_v55  ;;  %v2291_v55 = vld [vmem:[#allocation2 + $0x8] sm:$0xff]  }
 0x10b   : > { %606 = vmatprep.mubr.bf16.mxu0 %v2408_v0 }
 0x10c   : > { %2153 = vrot.lane.b32.xlu0 %v2132_v52, %s2410_s15 }
 0x10e   : > { %2163 = vrot.lane.b32.xlu1 %v2142_v53, %s2410_s15  ;;  %s2415_s15 = smov [#allocation5]  }
 0x110   : > { %719 = vperm.xlu0 %2125, %v705_v56   ;;  %v2293_v56 = vld [vmem:[#allocation2 + $0x20] sm:$0xff]  }
 0x112   : > { %724 = vperm.xlu1 %2126, %v706_v58   ;;  %1916 = vmatmul.mubr.msk.bf16.gmra.mxu0 %vm328_vm0, %v2292_v57  ;;  %v2294_v57 = vld [vmem:[#allocation2 + $0x28] sm:$0xff]  }
 0x113   : > { %875 = vmatprep.mubr.bf16.mxu0 %v2408_v0 }
 0x114   : > { %709 = vperm.xlu0 %2125, %v703_v59  }
 0x116   : > { %714 = vperm.xlu1 %2126, %v704_v60  }
 0x172   : > { %v2129_v2 = vpop.permute.xlu0 %2128 }
 0x173   : > { %v2131_v4 = vunpack.i.h.bf16 %v2129_v2  ;;  %v2130_v5 = vunpack.i.l.bf16 %v2129_v2 }
 0x174   : > { %v2139_v3 = vpop.permute.xlu1 %2138 }
 0x175   : > { %v2141_v6 = vunpack.i.h.bf16 %v2139_v3  ;;  %v2140_v7 = vunpack.i.l.bf16 %v2139_v3 }
 0x176   : > { %v2134_v12 = vpop.permute.xlu0 %2133 }
 0x177   : > { %v415_v8 = vsel %vm412_vm1, %v2130_v5, %v2140_v7  ;;  %v416_v9 = vsel %vm412_vm1, %v2131_v4, %v2141_v6  ;;  %v419_v10 = vsel %vm412_vm1, %v2140_v7, %v2130_v5  ;;  %v420_v11 = vsel %vm412_vm1, %v2141_v6, %v2131_v4 }
 0x178   : > { %v1900_v14 = vpack.c.bf16 %v416_v9, %v415_v8  ;;  %v1903_v15 = vpack.c.bf16 %v420_v11, %v419_v10  ;;  %v2144_v16 = vpop.permute.xlu1 %2143  ;;  %v2136_v18 = vunpack.i.h.bf16 %v2134_v12  ;;  %v2135_v19 = vunpack.i.l.bf16 %v2134_v12 }
 0x179   : > { %v2146_v20 = vunpack.i.h.bf16 %v2144_v16  ;;  %v2145_v21 = vunpack.i.l.bf16 %v2144_v16 }
 0x17a   : > { %1901 = vmatprep.subr.msk.bf16.mxu1 %vm2577_vm4, %v1900_v14  ;;  %v2149_v26 = vpop.permute.xlu0 %2148 }
 0x17b   : > { %v413_v22 = vsel %vm412_vm1, %v2135_v19, %v2145_v21  ;;  %v414_v23 = vsel %vm412_vm1, %v2136_v18, %v2146_v20  ;;  %v417_v24 = vsel %vm412_vm1, %v2145_v21, %v2135_v19  ;;  %v418_v25 = vsel %vm412_vm1, %v2146_v20, %v2136_v18  ;;  %1904 = vmatpush1.bf16.msk.msra.mxu1 %vm2581_vm5, %v1903_v15 }
 0x17c   : > { %v1906_v27 = vpack.c.bf16 %v414_v23, %v413_v22  ;;  %v1909_v28 = vpack.c.bf16 %v418_v25, %v417_v24  ;;  %v2159_v29 = vpop.permute.xlu1 %2158  ;;  %v2151_v30 = vunpack.i.h.bf16 %v2149_v26  ;;  %v2150_v31 = vunpack.i.l.bf16 %v2149_v26 }
 0x17d   : > { %v2161_v32 = vunpack.i.h.bf16 %v2159_v29  ;;  %v2160_v33 = vunpack.i.l.bf16 %v2159_v29  ;;  %vm283_vm1 = vcmp.lt.s32.totalorder %v2564_v1, 125 }
 0x17e   : > { %1907 = vmatprep.subr.msk.bf16.mxu1 %vm2577_vm4, %v1906_v27  ;;  %v2154_v39 = vpop.permute.xlu0 %2153  ;;  %vm2715_vm2 = vmpackc.low %vm283_vm1, %vm283_vm1  ;;  %vm1108_vm4 = vcmp.lt.s32.totalorder %v2561_v62, 4 }
 0x17f   : > { %v448_v35 = vsel %vm280_vm6, %v2150_v31, %v2160_v33  ;;  %v449_v36 = vsel %vm280_vm6, %v2151_v30, %v2161_v32  ;;  %v452_v37 = vsel %vm280_vm6, %v2160_v33, %v2150_v31  ;;  %v453_v38 = vsel %vm280_vm6, %v2161_v32, %v2151_v30  ;;  %1910 = vmatpush1.bf16.msk.msra.mxu1 %vm2581_vm5, %v1909_v28 }
 0x180   : > { %v1920_v41 = vpack.c.bf16 %v453_v38, %v452_v37  ;;  %v1923_v42 = vpack.c.bf16 %v449_v36, %v448_v35  ;;  %v2164_v43 = vpop.permute.xlu1 %2163  ;;  %v2156_v45 = vunpack.i.h.bf16 %v2154_v39  ;;  %v2155_v46 = vunpack.i.l.bf16 %v2154_v39 }
 0x181   : > { %v2166_v47 = vunpack.i.h.bf16 %v2164_v43  ;;  %v2165_v48 = vunpack.i.l.bf16 %v2164_v43  ;;  %vm279_vm5 = vcmp.ge.s32.totalorder %v2564_v1, 4 }
 0x182   : > { %1911 = vmatmul.mubr.msk.bf16.vlgmr.msra.gmra.mxu1 %vm328_vm0, %v2289_v34  ;;  %1921 = vmatprep.subr.msk.bf16.mxu1 %vm2611_vm8, %v1920_v41  ;;  %vm2777_vm7 = vmpackc.low %vm279_vm5, %vm279_vm5 }
 0x183   : > { %v446_v49 = vsel %vm280_vm6, %v2155_v46, %v2165_v48  ;;  %v447_v50 = vsel %vm280_vm6, %v2156_v45, %v2166_v47  ;;  %v450_v51 = vsel %vm280_vm6, %v2165_v48, %v2155_v46  ;;  %v451_v52 = vsel %vm280_vm6, %v2166_v47, %v2156_v45  ;;  %1924 = vmatpush1.bf16.msk.msra.mxu1 %vm2618_vm9, %v1923_v42 }
 0x184   : > { %v1926_v53 = vpack.c.bf16 %v451_v52, %v450_v51  ;;  %v1929_v54 = vpack.c.bf16 %v447_v50, %v446_v49  ;;  %537 = vmatprep.mubr.bf16.mxu1 %v2408_v0  ;;  %vm278_vm6 = vcmp.ge.s32.totalorder %v2561_v62, 4 }
 0x186   : > { %1927 = vmatprep.subr.msk.bf16.mxu1 %vm2611_vm8, %v1926_v53  ;;  %vm2781_vm8 = vmpackc.low %vm278_vm6, %vm278_vm6 }
 0x187   : > { %1930 = vmatpush1.bf16.msk.msra.mxu1 %vm2618_vm9, %v1929_v54  ;;  %vm284_vm9 = vcmp.lt.s32.totalorder %v2561_v62, 124  ;;  %v2311_v62 = vld [vmem:[#allocation2 + $0xb0] sm:$0xff]  }
 0x188   : > { %vm2818_vm1 = vmpackc.low %vm284_vm9, %vm284_vm9 }
 0x18a   : > { %1912 = vmatmul.mubr.msk.bf16.gmra.mxu1 %vm328_vm0, %v2291_v55 }
 0x18b   : > { %674 = vmatprep.mubr.bf16.mxu1 %v2408_v0  ;;  %v720_v20 = vpop.permute.xlu0 %719 }
 0x18d   : > { %v725_v16 = vpop.permute.xlu1 %724 }
 0x18f   : > { %v710_v41 = vpop.permute.xlu0 %709 }
 0x191   : > { %v715_v34 = vpop.permute.xlu1 %714 }
 0x192   : > { %1931 = vmatmul.mubr.msk.bf16.vlgmr.msra.gmra.mxu1 %vm328_vm0, %v2293_v56 }
 0x193   : > { %684 = vmatprep.mubr.bf16.mxu1 %v2408_v0 }
 0x19a   : > { %1932 = vmatmul.mubr.msk.bf16.gmra.mxu1 %vm328_vm0, %v2294_v57 }
 0x19b   : > { %944 = vmatprep.mubr.bf16.mxu1 %v2408_v0 }
 0x1ca   : > { %v598_v58 = vpop.f32.mrf.mxu0 }
 0x1cc   : > { %v600_v61 = vpop.f32.mrf.mxu0 }
 0x1ce   : > { %v602_v2 = vpop.f32.mrf.mxu0 }
 0x1d0   : > { %v604_v5 = vpop.f32.mrf.mxu0 }
 0x1d2   : > { %v608_v8 = vpop.f32.mrf.mxu0 }
 0x1d4   : > { %v610_v11 = vpop.f32.mrf.mxu0 }
 0x1d6   : > { %v612_v14 = vpop.f32.mrf.mxu0 }
 0x1d8   : > { %v614_v25 = vpop.f32.mrf.mxu0 }
 0x242   : > { %v529_v59 = vpop.f32.mrf.mxu1 }
 0x243   : > { %v599_v24 = vadd.f32 %v598_v58, %v529_v59 }
 0x244   : > { %v531_v60 = vpop.f32.mrf.mxu1 }
 0x245   : > { %v601_v28 = vadd.f32 %v600_v61, %v531_v60 }
 0x246   : > { %v533_v63 = vpop.f32.mrf.mxu1 }
 0x247   : > { %v603_v18 = vadd.f32 %v602_v2, %v533_v63 }
 0x248   : > { %v535_v3 = vpop.f32.mrf.mxu1 }
 0x249   : > { %v605_v21 = vadd.f32 %v604_v5, %v535_v3  ;;  %v1971_v5 = vld [vmem:[%s2992_s4 + $0x30] sm:$0xff] }
 0x24a   : > { %v539_v4 = vpop.f32.mrf.mxu1 }
 0x24b   : > { %v609_v17 = vadd.f32 %v608_v8, %v539_v4  ;;  %v2296_v4 = vld [vmem:[#allocation2 + $0x40] sm:$0xff]  }
 0x24c   : > { %v541_v6 = vpop.f32.mrf.mxu1  ;;  %v1969_v8 = vld [vmem:[%s2992_s4 + $0x20] sm:$0xff] }
 0x24d   : > { %v611_v22 = vadd.f32 %v610_v11, %v541_v6  ;;  %v2298_v6 = vld [vmem:[#allocation2 + $0x48] sm:$0xff]  }
 0x24e   : > { %v543_v7 = vpop.f32.mrf.mxu1 }
 0x24f   : > { %v613_v29 = vadd.f32 %v612_v14, %v543_v7  ;;  %v1972_v7 = vld [vmem:[%s2992_s4 + $0x38] sm:$0xff] }
 0x250   : > { %v545_v9 = vpop.f32.mrf.mxu1 }
 0x251   : > { %v615_v35 = vadd.f32 %v614_v25, %v545_v9  ;;  %v1970_v9 = vld [vmem:[%s2992_s4 + $0x28] sm:$0xff] }
 0x252   : > { %v676_v10 = vpop.f32.mrf.mxu1 }
 0x253   : > { %v695_v32 = vadd.f32 %v676_v10, %v599_v24 }
 0x254   : > { %v678_v12 = vpop.f32.mrf.mxu1 }
 0x255   : > { %v696_v36 = vadd.f32 %v678_v12, %v601_v28  ;;  %v727_v46 = vadd.f32 %v710_v41, %v695_v32 }
 0x256   : > { %v680_v13 = vpop.f32.mrf.mxu1 }
 0x257   : > { %v697_v26 = vadd.f32 %v680_v13, %v603_v18  ;;  %v728_v47 = vadd.f32 %v710_v41, %v696_v36  ;;  %v735_v56 = vmax.f32 %v727_v46, 0.0 }
 0x258   : > { %v682_v15 = vpop.f32.mrf.mxu1 }
 0x259   : > { %v698_v30 = vadd.f32 %v682_v15, %v605_v21  ;;  %v729_v39 = vadd.f32 %v715_v34, %v697_v26  ;;  %v736_v57 = vmax.f32 %v728_v47, 0.0 }
 0x25a   : > { %v686_v19 = vpop.f32.mrf.mxu1 }
 0x25b   : > { %v699_v23 = vadd.f32 %v686_v19, %v609_v17  ;;  %v730_v42 = vadd.f32 %v715_v34, %v698_v30  ;;  %v737_v51 = vmax.f32 %v729_v39, 0.0 }
 0x25c   : > { %v688_v27 = vpop.f32.mrf.mxu1 }
 0x25d   : > { %v700_v31 = vadd.f32 %v688_v27, %v611_v22  ;;  %v731_v37 = vadd.f32 %v720_v20, %v699_v23  ;;  %v738_v52 = vmax.f32 %v730_v42, 0.0  ;;  %v2172_v63 = vpack.i.bf16 %v737_v51, %v735_v56 }
 0x25e   : > { %v690_v33 = vpop.f32.mrf.mxu1  ;;  %v814_v3 = vpack.c.bf16 %v737_v51, %v735_v56 }
 0x25f   : > { %v701_v38 = vadd.f32 %v690_v33, %v613_v29  ;;  %v732_v43 = vadd.f32 %v720_v20, %v700_v31  ;;  %v739_v48 = vmax.f32 %v731_v37, 0.0  ;;  %v815_v61 = vpack.c.bf16 %v738_v52, %v736_v57 }
 0x260   : > { %v692_v40 = vpop.f32.mrf.mxu1  ;;  %v2182_v2 = vpack.i.bf16 %v738_v52, %v736_v57 }
 0x261   : > { %v733_v44 = vadd.f32 %v725_v16, %v701_v38  ;;  %v702_v45 = vadd.f32 %v692_v40, %v615_v35  ;;  %v740_v53 = vmax.f32 %v732_v43, 0.0  ;;  %v2295_v43 = vld [vmem:[#allocation2 + $0x30] sm:$0xff]  }
 0x263   : > { %v741_v49 = vmax.f32 %v733_v44, 0.0  ;;  %v734_v50 = vadd.f32 %v725_v16, %v702_v45 }
 0x265   : > { %v742_v54 = vmax.f32 %v734_v50, 0.0  ;;  %v2167_v55 = vpack.i.bf16 %v741_v49, %v739_v48  ;;  %v816_v60 = vpack.c.bf16 %v741_v49, %v739_v48 }
 0x267   : > { %2168 = vrot.lane.b32.xlu0 %v2167_v55, %s2411_s8  ;;  %v2177_v58 = vpack.i.bf16 %v742_v54, %v740_v53  ;;  %v817_v59 = vpack.c.bf16 %v742_v54, %v740_v53 }
 0x269   : > { %2178 = vrot.lane.b32.xlu1 %v2177_v58, %s2411_s8  ;;  %924 = vmatprep.subr.bf16.mxu1 %v817_v59 }
 0x26a   : > { %925 = vmatpush1.bf16.msra.mxu1 %v816_v60 }
 0x26b   : > { %926 = vmatprep.subr.bf16.mxu1 %v815_v61  ;;  %2173 = vrot.lane.b32.xlu0 %v2172_v63, %s2411_s8 }
 0x26d   : > { %2183 = vrot.lane.b32.xlu1 %v2182_v2, %s2411_s8 }
 0x26e   : > { %927 = vmatpush1.bf16.msra.mxu1 %v814_v3  ;;  %v2299_v3 = vld [vmem:[#allocation2 + $0x50] sm:$0xff]  }
 0x26f   : > { %2188 = vrot.lane.b32.xlu0 %v2167_v55, %s2412_s9 }
 0x271   : > { %2198 = vrot.lane.b32.xlu1 %v2177_v58, %s2412_s9  ;;  %1951 = vmatmul.mubr.msk.bf16.vlgmr.msra.gmra.mxu1 %vm328_vm0, %v2296_v4  ;;  %v2300_v4 = vld [vmem:[#allocation2 + $0x58] sm:$0xff]  }
 0x272   : > { %954 = vmatprep.mubr.bf16.mxu1 %v2408_v0 }
 0x273   : > { %2193 = vrot.lane.b32.xlu0 %v2172_v63, %s2412_s9 }
 0x275   : > { %2203 = vrot.lane.b32.xlu1 %v2182_v2, %s2412_s9  ;;  %v2297_v2 = vld [vmem:[#allocation2 + $0x38] sm:$0xff]  }
 0x277   : > { %1068 = vperm.xlu0 %2125, %v1971_v5  }
 0x279   : > { %1073 = vperm.xlu1 %2126, %v1972_v7   ;;  %1952 = vmatmul.mubr.msk.bf16.gmra.mxu1 %vm328_vm0, %v2298_v6 }
 0x27a   : > { %1224 = vmatprep.mubr.bf16.mxu1 %v2408_v0 }
 0x27b   : > { %1058 = vperm.xlu0 %2125, %v1969_v8  }
 0x27d   : > { %1063 = vperm.xlu1 %2126, %v1970_v9  }
 0x2d9   : > { %v2169_v10 = vpop.permute.xlu0 %2168 }
 0x2da   : > { %v2171_v12 = vunpack.i.h.bf16 %v2169_v10  ;;  %v2170_v13 = vunpack.i.l.bf16 %v2169_v10 }
 0x2db   : > { %v2179_v11 = vpop.permute.xlu1 %2178 }
 0x2dc   : > { %v2181_v14 = vunpack.i.h.bf16 %v2179_v11  ;;  %v2180_v15 = vunpack.i.l.bf16 %v2179_v11 }
 0x2dd   : > { %v2174_v16 = vpop.permute.xlu0 %2173 }
 0x2de   : > { %v762_v17 = vsel %vm759_vm10, %v2170_v13, %v2180_v15  ;;  %v763_v18 = vsel %vm759_vm10, %v2171_v12, %v2181_v14  ;;  %v766_v19 = vsel %vm759_vm10, %v2180_v15, %v2170_v13  ;;  %v767_v20 = vsel %vm759_vm10, %v2181_v14, %v2171_v12 }
 0x2df   : > { %v1936_v22 = vpack.c.bf16 %v763_v18, %v762_v17  ;;  %v1939_v23 = vpack.c.bf16 %v767_v20, %v766_v19  ;;  %v2184_v24 = vpop.permute.xlu1 %2183  ;;  %v2176_v26 = vunpack.i.h.bf16 %v2174_v16  ;;  %v2175_v27 = vunpack.i.l.bf16 %v2174_v16 }
 0x2e0   : > { %v2186_v28 = vunpack.i.h.bf16 %v2184_v24  ;;  %v2185_v29 = vunpack.i.l.bf16 %v2184_v24 }
 0x2e1   : > { %1937 = vmatprep.subr.msk.bf16.mxu0 %vm2681_vm13, %v1936_v22  ;;  %v2189_v30 = vpop.permute.xlu0 %2188 }
 0x2e2   : > { %v760_v31 = vsel %vm759_vm10, %v2175_v27, %v2185_v29  ;;  %v761_v32 = vsel %vm759_vm10, %v2176_v26, %v2186_v28  ;;  %v764_v33 = vsel %vm759_vm10, %v2185_v29, %v2175_v27  ;;  %v765_v34 = vsel %vm759_vm10, %v2186_v28, %v2176_v26  ;;  %1940 = vmatpush1.bf16.msk.msra.mxu0 %vm2685_vm14, %v1939_v23 }
 0x2e3   : > { %v1942_v35 = vpack.c.bf16 %v761_v32, %v760_v31  ;;  %v1945_v36 = vpack.c.bf16 %v765_v34, %v764_v33  ;;  %v2199_v37 = vpop.permute.xlu1 %2198  ;;  %v2191_v38 = vunpack.i.h.bf16 %v2189_v30  ;;  %v2190_v39 = vunpack.i.l.bf16 %v2189_v30 }
 0x2e4   : > { %v2201_v40 = vunpack.i.h.bf16 %v2199_v37  ;;  %v2200_v41 = vunpack.i.l.bf16 %v2199_v37 }
 0x2e5   : > { %v2194_v42 = vpop.permute.xlu0 %2193  ;;  %1943 = vmatprep.subr.msk.bf16.mxu0 %vm2681_vm13, %v1942_v35 }
 0x2e6   : > { %v795_v44 = vsel %vm282_vm15, %v2190_v39, %v2200_v41  ;;  %v796_v45 = vsel %vm282_vm15, %v2191_v38, %v2201_v40  ;;  %v799_v46 = vsel %vm282_vm15, %v2200_v41, %v2190_v39  ;;  %v800_v47 = vsel %vm282_vm15, %v2201_v40, %v2191_v38  ;;  %1946 = vmatpush1.bf16.msk.msra.mxu0 %vm2685_vm14, %v1945_v36 }
 0x2e7   : > { %v1956_v49 = vpack.c.bf16 %v800_v47, %v799_v46  ;;  %v1959_v50 = vpack.c.bf16 %v796_v45, %v795_v44  ;;  %v2204_v51 = vpop.permute.xlu1 %2203  ;;  %v2196_v53 = vunpack.i.h.bf16 %v2194_v42  ;;  %v2195_v54 = vunpack.i.l.bf16 %v2194_v42 }
 0x2e8   : > { %v2206_v55 = vunpack.i.h.bf16 %v2204_v51  ;;  %v2205_v56 = vunpack.i.l.bf16 %v2204_v51 }
 0x2e9   : > { %1947 = vmatmul.mubr.msk.bf16.vlgmr.msra.gmra.mxu0 %vm328_vm0, %v2295_v43  ;;  %1957 = vmatprep.subr.msk.bf16.mxu0 %vm2715_vm2, %v1956_v49 }
 0x2ea   : > { %v793_v57 = vsel %vm282_vm15, %v2195_v54, %v2205_v56  ;;  %v794_v58 = vsel %vm282_vm15, %v2196_v53, %v2206_v55  ;;  %v797_v59 = vsel %vm282_vm15, %v2205_v56, %v2195_v54  ;;  %v798_v60 = vsel %vm282_vm15, %v2206_v55, %v2196_v53  ;;  %1960 = vmatpush1.bf16.msk.msra.mxu0 %vm2722_vm3, %v1959_v50 }
 0x2eb   : > { %v1962_v61 = vpack.c.bf16 %v798_v60, %v797_v59  ;;  %v1965_v63 = vpack.c.bf16 %v794_v58, %v793_v57  ;;  %885 = vmatprep.mubr.bf16.mxu0 %v2408_v0 }
 0x2ed   : > { %1963 = vmatprep.subr.msk.bf16.mxu0 %vm2715_vm2, %v1962_v61 }
 0x2ee   : > { %1966 = vmatpush1.bf16.msk.msra.mxu0 %vm2722_vm3, %v1965_v63 }
 0x2f1   : > { %1948 = vmatmul.mubr.msk.bf16.gmra.mxu0 %vm328_vm0, %v2297_v2 }
 0x2f2   : > { %1022 = vmatprep.mubr.bf16.mxu0 %v2408_v0  ;;  %v1069_v30 = vpop.permute.xlu0 %1068 }
 0x2f4   : > { %v1074_v26 = vpop.permute.xlu1 %1073 }
 0x2f6   : > { %v1059_v53 = vpop.permute.xlu0 %1058 }
 0x2f8   : > { %v1064_v44 = vpop.permute.xlu1 %1063 }
 0x2f9   : > { %1967 = vmatmul.mubr.msk.bf16.vlgmr.msra.gmra.mxu0 %vm328_vm0, %v2299_v3 }
 0x2fa   : > { %1032 = vmatprep.mubr.bf16.mxu0 %v2408_v0 }
 0x301   : > { %1968 = vmatmul.mubr.msk.bf16.gmra.mxu0 %vm328_vm0, %v2300_v4 }
 0x302   : > { %1293 = vmatprep.mubr.bf16.mxu0 %v2408_v0 }
 0x331   : > { %v946_v5 = vpop.f32.mrf.mxu1 }
 0x333   : > { %v948_v8 = vpop.f32.mrf.mxu1 }
 0x335   : > { %v950_v10 = vpop.f32.mrf.mxu1 }
 0x337   : > { %v952_v13 = vpop.f32.mrf.mxu1 }
 0x339   : > { %v956_v16 = vpop.f32.mrf.mxu1 }
 0x33b   : > { %v958_v19 = vpop.f32.mrf.mxu1 }
 0x33d   : > { %v960_v23 = vpop.f32.mrf.mxu1 }
 0x33f   : > { %v962_v35 = vpop.f32.mrf.mxu1 }
 0x3a9   : > { %v877_v6 = vpop.f32.mrf.mxu0 }
 0x3aa   : > { %v947_v34 = vadd.f32 %v946_v5, %v877_v6 }
 0x3ab   : > { %v879_v7 = vpop.f32.mrf.mxu0 }
 0x3ac   : > { %v949_v38 = vadd.f32 %v948_v8, %v879_v7 }
 0x3ad   : > { %v881_v9 = vpop.f32.mrf.mxu0 }
 0x3ae   : > { %v951_v28 = vadd.f32 %v950_v10, %v881_v9 }
 0x3af   : > { %v883_v11 = vpop.f32.mrf.mxu0 }
 0x3b0   : > { %v953_v31 = vadd.f32 %v952_v13, %v883_v11 }
 0x3b1   : > { %v887_v12 = vpop.f32.mrf.mxu0 }
 0x3b2   : > { %v957_v27 = vadd.f32 %v956_v16, %v887_v12  ;;  %v2302_v16 = vld [vmem:[#allocation2 + $0x70] sm:$0xff]  }
 0x3b3   : > { %v889_v14 = vpop.f32.mrf.mxu0 }
 0x3b4   : > { %v959_v32 = vadd.f32 %v958_v19, %v889_v14  ;;  %v2012_v19 = vld [vmem:[%s2992_s4 + $0x58] sm:$0xff] }
 0x3b5   : > { %v891_v15 = vpop.f32.mrf.mxu0 }
 0x3b6   : > { %v961_v39 = vadd.f32 %v960_v23, %v891_v15 }
 0x3b7   : > { %v893_v17 = vpop.f32.mrf.mxu0 }
 0x3b8   : > { %v963_v45 = vadd.f32 %v962_v35, %v893_v17  ;;  %v2011_v17 = vld [vmem:[%s2992_s4 + $0x50] sm:$0xff] }
 0x3b9   : > { %v1024_v18 = vpop.f32.mrf.mxu0 }
 0x3ba   : > { %v1043_v42 = vadd.f32 %v1024_v18, %v947_v34  ;;  %v2304_v18 = vld [vmem:[#allocation2 + $0x78] sm:$0xff]  }
 0x3bb   : > { %v1026_v20 = vpop.f32.mrf.mxu0 }
 0x3bc   : > { %v1044_v46 = vadd.f32 %v1026_v20, %v949_v38  ;;  %v1076_v58 = vadd.f32 %v1059_v53, %v1043_v42  ;;  %v2009_v20 = vld [vmem:[%s2992_s4 + $0x40] sm:$0xff] }
 0x3bd   : > { %v1028_v22 = vpop.f32.mrf.mxu0 }
 0x3be   : > { %v1045_v36 = vadd.f32 %v1028_v22, %v951_v28  ;;  %v1077_v59 = vadd.f32 %v1059_v53, %v1044_v46  ;;  %v1084_v7 = vmax.f32 %v1076_v58, 0.0  ;;  %v2010_v22 = vld [vmem:[%s2992_s4 + $0x48] sm:$0xff] }
 0x3bf   : > { %v1030_v24 = vpop.f32.mrf.mxu0 }
 0x3c0   : > { %v1046_v40 = vadd.f32 %v1030_v24, %v953_v31  ;;  %v1078_v50 = vadd.f32 %v1064_v44, %v1045_v36  ;;  %v1085_v8 = vmax.f32 %v1077_v59, 0.0  ;;  %v2301_v59 = vld [vmem:[#allocation2 + $0x60] sm:$0xff]  }
 0x3c1   : > { %v1034_v29 = vpop.f32.mrf.mxu0 }
 0x3c2   : > { %v1047_v33 = vadd.f32 %v1034_v29, %v957_v27  ;;  %v1079_v54 = vadd.f32 %v1064_v44, %v1046_v40  ;;  %v1086_v2 = vmax.f32 %v1078_v50, 0.0 }
 0x3c3   : > { %v1036_v37 = vpop.f32.mrf.mxu0 }
 0x3c4   : > { %v1048_v41 = vadd.f32 %v1036_v37, %v959_v32  ;;  %v1080_v47 = vadd.f32 %v1069_v30, %v1047_v33  ;;  %v1087_v3 = vmax.f32 %v1079_v54, 0.0  ;;  %v2212_v13 = vpack.i.bf16 %v1086_v2, %v1084_v7 }
 0x3c5   : > { %v1038_v43 = vpop.f32.mrf.mxu0  ;;  %v1163_v15 = vpack.c.bf16 %v1086_v2, %v1084_v7 }
 0x3c6   : > { %v1049_v49 = vadd.f32 %v1038_v43, %v961_v39  ;;  %v1081_v55 = vadd.f32 %v1069_v30, %v1048_v41  ;;  %v1088_v60 = vmax.f32 %v1080_v47, 0.0  ;;  %v1164_v12 = vpack.c.bf16 %v1087_v3, %v1085_v8 }
 0x3c7   : > { %v1040_v51 = vpop.f32.mrf.mxu0  ;;  %v2222_v14 = vpack.i.bf16 %v1087_v3, %v1085_v8 }
 0x3c8   : > { %v1082_v56 = vadd.f32 %v1074_v26, %v1049_v49  ;;  %v1050_v57 = vadd.f32 %v1040_v51, %v963_v45  ;;  %v1089_v4 = vmax.f32 %v1081_v55, 0.0 }
 0x3ca   : > { %v1090_v61 = vmax.f32 %v1082_v56, 0.0  ;;  %v1083_v63 = vadd.f32 %v1074_v26, %v1050_v57 }
 0x3cc   : > { %v1091_v5 = vmax.f32 %v1083_v63, 0.0  ;;  %v2207_v6 = vpack.i.bf16 %v1090_v61, %v1088_v60  ;;  %v1165_v11 = vpack.c.bf16 %v1090_v61, %v1088_v60 }
 0x3ce   : > { %2208 = vrot.lane.b32.xlu0 %v2207_v6, %s2413_s23  ;;  %v2217_v9 = vpack.i.bf16 %v1091_v5, %v1089_v4  ;;  %v1166_v10 = vpack.c.bf16 %v1091_v5, %v1089_v4 }
 0x3d0   : > { %2218 = vrot.lane.b32.xlu1 %v2217_v9, %s2413_s23  ;;  %1273 = vmatprep.subr.bf16.mxu0 %v1166_v10 }
 0x3d1   : > { %1274 = vmatpush1.bf16.msra.mxu0 %v1165_v11 }
 0x3d2   : > { %1275 = vmatprep.subr.bf16.mxu0 %v1164_v12  ;;  %2213 = vrot.lane.b32.xlu0 %v2212_v13, %s2413_s23 }
 0x3d4   : > { %2223 = vrot.lane.b32.xlu1 %v2222_v14, %s2413_s23 }
 0x3d5   : > { %1276 = vmatpush1.bf16.msra.mxu0 %v1163_v15 }
 0x3d6   : > { %2228 = vrot.lane.b32.xlu0 %v2207_v6, %s2414_s25 }
 0x3d8   : > { %2238 = vrot.lane.b32.xlu1 %v2217_v9, %s2414_s25  ;;  %1991 = vmatmul.mubr.msk.bf16.vlgmr.msra.gmra.mxu0 %vm328_vm0, %v2302_v16 }
 0x3d9   : > { %1303 = vmatprep.mubr.bf16.mxu0 %v2408_v0 }
 0x3da   : > { %2233 = vrot.lane.b32.xlu0 %v2212_v13, %s2414_s25 }
 0x3dc   : > { %2243 = vrot.lane.b32.xlu1 %v2222_v14, %s2414_s25 }
 0x3de   : > { %1417 = vperm.xlu0 %2125, %v2011_v17   ;;  %v2303_v17 = vld [vmem:[#allocation2 + $0x68] sm:$0xff]  }
 0x3e0   : > { %1422 = vperm.xlu1 %2126, %v2012_v19   ;;  %1992 = vmatmul.mubr.msk.bf16.gmra.mxu0 %vm328_vm0, %v2304_v18  ;;  %v2305_v18 = vld [vmem:[#allocation2 + $0x80] sm:$0xff]   ;;  %v2306_v19 = vld [vmem:[#allocation2 + $0x88] sm:$0xff]  }
 0x3e1   : > { %1571 = vmatprep.mubr.bf16.mxu0 %v2408_v0 }
 0x3e2   : > { %1407 = vperm.xlu0 %2125, %v2009_v20  }
 0x3e4   : > { %1412 = vperm.xlu1 %2126, %v2010_v22  }
 0x440   : > { %v2209_v23 = vpop.permute.xlu0 %2208 }
 0x441   : > { %v2211_v26 = vunpack.i.h.bf16 %v2209_v23  ;;  %v2210_v27 = vunpack.i.l.bf16 %v2209_v23 }
 0x442   : > { %v2219_v24 = vpop.permute.xlu1 %2218 }
 0x443   : > { %v2221_v28 = vunpack.i.h.bf16 %v2219_v24  ;;  %v2220_v29 = vunpack.i.l.bf16 %v2219_v24 }
 0x444   : > { %v2214_v30 = vpop.permute.xlu0 %2213 }
 0x445   : > { %v1111_v31 = vsel %vm1108_vm4, %v2210_v27, %v2220_v29  ;;  %v1112_v32 = vsel %vm1108_vm4, %v2211_v26, %v2221_v28  ;;  %v1115_v33 = vsel %vm1108_vm4, %v2220_v29, %v2210_v27  ;;  %v1116_v34 = vsel %vm1108_vm4, %v2221_v28, %v2211_v26 }
 0x446   : > { %v1976_v36 = vpack.c.bf16 %v1112_v32, %v1111_v31  ;;  %v1979_v37 = vpack.c.bf16 %v1116_v34, %v1115_v33  ;;  %v2224_v38 = vpop.permute.xlu1 %2223  ;;  %v2216_v40 = vunpack.i.h.bf16 %v2214_v30  ;;  %v2215_v41 = vunpack.i.l.bf16 %v2214_v30 }
 0x447   : > { %v2226_v42 = vunpack.i.h.bf16 %v2224_v38  ;;  %v2225_v43 = vunpack.i.l.bf16 %v2224_v38 }
 0x448   : > { %1977 = vmatprep.subr.msk.bf16.mxu1 %vm2777_vm7, %v1976_v36  ;;  %v2229_v44 = vpop.permute.xlu0 %2228 }
 0x449   : > { %v1109_v45 = vsel %vm1108_vm4, %v2215_v41, %v2225_v43  ;;  %v1110_v46 = vsel %vm1108_vm4, %v2216_v40, %v2226_v42  ;;  %v1113_v47 = vsel %vm1108_vm4, %v2225_v43, %v2215_v41  ;;  %v1114_v49 = vsel %vm1108_vm4, %v2226_v42, %v2216_v40  ;;  %1980 = vmatpush1.bf16.msk.msra.mxu1 %vm2781_vm8, %v1979_v37 }
 0x44a   : > { %v1982_v50 = vpack.c.bf16 %v1110_v46, %v1109_v45  ;;  %v1985_v51 = vpack.c.bf16 %v1114_v49, %v1113_v47  ;;  %v2239_v53 = vpop.permute.xlu1 %2238  ;;  %v2231_v54 = vunpack.i.h.bf16 %v2229_v44  ;;  %v2230_v55 = vunpack.i.l.bf16 %v2229_v44 }
 0x44b   : > { %v2241_v56 = vunpack.i.h.bf16 %v2239_v53  ;;  %v2240_v57 = vunpack.i.l.bf16 %v2239_v53 }
 0x44c   : > { %v2234_v58 = vpop.permute.xlu0 %2233  ;;  %1983 = vmatprep.subr.msk.bf16.mxu1 %vm2777_vm7, %v1982_v50 }
 0x44d   : > { %v1144_v60 = vsel %vm284_vm9, %v2230_v55, %v2240_v57  ;;  %v1145_v61 = vsel %vm284_vm9, %v2231_v54, %v2241_v56  ;;  %v1148_v63 = vsel %vm284_vm9, %v2240_v57, %v2230_v55  ;;  %v1149_v1 = vsel %vm284_vm9, %v2241_v56, %v2231_v54  ;;  %1986 = vmatpush1.bf16.msk.msra.mxu1 %vm2781_vm8, %v1985_v51 }
 0x44e   : > { %v1996_v3 = vpack.c.bf16 %v1149_v1, %v1148_v63  ;;  %v1999_v4 = vpack.c.bf16 %v1145_v61, %v1144_v60  ;;  %v2244_v5 = vpop.permute.xlu1 %2243  ;;  %v2236_v7 = vunpack.i.h.bf16 %v2234_v58  ;;  %v2235_v8 = vunpack.i.l.bf16 %v2234_v58 }
 0x44f   : > { %v2246_v9 = vunpack.i.h.bf16 %v2244_v5  ;;  %v2245_v10 = vunpack.i.l.bf16 %v2244_v5 }
 0x450   : > { %1987 = vmatmul.mubr.msk.bf16.vlgmr.msra.gmra.mxu1 %vm328_vm0, %v2301_v59  ;;  %1997 = vmatprep.subr.msk.bf16.mxu1 %vm2811_vm12, %v1996_v3 }
 0x451   : > { %v1142_v11 = vsel %vm284_vm9, %v2235_v8, %v2245_v10  ;;  %v1143_v12 = vsel %vm284_vm9, %v2236_v7, %v2246_v9  ;;  %v1146_v13 = vsel %vm284_vm9, %v2245_v10, %v2235_v8  ;;  %v1147_v14 = vsel %vm284_vm9, %v2246_v9, %v2236_v7  ;;  %2000 = vmatpush1.bf16.msk.msra.mxu1 %vm2818_vm1, %v1999_v4 }
 0x452   : > { %v2002_v15 = vpack.c.bf16 %v1147_v14, %v1146_v13  ;;  %v2005_v16 = vpack.c.bf16 %v1143_v12, %v1142_v11  ;;  %1234 = vmatprep.mubr.bf16.mxu1 %v2408_v0 }
 0x454   : > { %2003 = vmatprep.subr.msk.bf16.mxu1 %vm2811_vm12, %v2002_v15 }
 0x455   : > { %2006 = vmatpush1.bf16.msk.msra.mxu1 %vm2818_vm1, %v2005_v16 }
 0x458   : > { %1988 = vmatmul.mubr.msk.bf16.gmra.mxu1 %vm328_vm0, %v2303_v17 }
 0x459   : > { %1371 = vmatprep.mubr.bf16.mxu1 %v2408_v0  ;;  %v1418_v45 = vpop.permute.xlu0 %1417 }
 0x45b   : > { %v1423_v41 = vpop.permute.xlu1 %1422 }
 0x45d   : > { %v1408_v6 = vpop.permute.xlu0 %1407 }
 0x45f   : > { %v1413_v61 = vpop.permute.xlu1 %1412 }
 0x460   : > { %2007 = vmatmul.mubr.msk.bf16.vlgmr.msra.gmra.mxu1 %vm328_vm0, %v2305_v18 }
 0x461   : > { %1381 = vmatprep.mubr.bf16.mxu1 %v2408_v0 }
 0x468   : > { %2008 = vmatmul.mubr.msk.bf16.gmra.mxu1 %vm328_vm0, %v2306_v19 }
 0x469   : > { %1640 = vmatprep.mubr.bf16.mxu1 %v2408_v0 }
 0x498   : > { %v1295_v20 = vpop.f32.mrf.mxu0 }
 0x49a   : > { %v1297_v24 = vpop.f32.mrf.mxu0 }
 0x49c   : > { %v1299_v27 = vpop.f32.mrf.mxu0 }
 0x49e   : > { %v1301_v30 = vpop.f32.mrf.mxu0 }
 0x4a0   : > { %v1305_v33 = vpop.f32.mrf.mxu0 }
 0x4a2   : > { %v1307_v36 = vpop.f32.mrf.mxu0 }
 0x4a4   : > { %v1309_v39 = vpop.f32.mrf.mxu0 }
 0x4a6   : > { %v1311_v51 = vpop.f32.mrf.mxu0 }
 0x510   : > { %v1226_v22 = vpop.f32.mrf.mxu1 }
 0x511   : > { %v1296_v50 = vadd.f32 %v1295_v20, %v1226_v22 }
 0x512   : > { %v1228_v23 = vpop.f32.mrf.mxu1 }
 0x513   : > { %v1298_v55 = vadd.f32 %v1297_v24, %v1228_v23 }
 0x514   : > { %v1230_v26 = vpop.f32.mrf.mxu1 }
 0x515   : > { %v1300_v43 = vadd.f32 %v1299_v27, %v1230_v26 }
 0x516   : > { %v1232_v28 = vpop.f32.mrf.mxu1 }
 0x517   : > { %v1302_v46 = vadd.f32 %v1301_v30, %v1232_v28 }
 0x518   : > { %v1236_v29 = vpop.f32.mrf.mxu1 }
 0x519   : > { %v1306_v42 = vadd.f32 %v1305_v33, %v1236_v29  ;;  %v2049_v33 = vld [vmem:[%s2992_s4 + $0x60] sm:$0xff] }
 0x51a   : > { %v1238_v31 = vpop.f32.mrf.mxu1 }
 0x51b   : > { %v1308_v47 = vadd.f32 %v1307_v36, %v1238_v31  ;;  %v2051_v36 = vld [vmem:[%s2992_s4 + $0x70] sm:$0xff] }
 0x51c   : > { %v1240_v32 = vpop.f32.mrf.mxu1 }
 0x51d   : > { %v1310_v56 = vadd.f32 %v1309_v39, %v1240_v32  ;;  %v2308_v32 = vld [vmem:[#allocation2 + $0xa0] sm:$0xff]  }
 0x51e   : > { %v1242_v34 = vpop.f32.mrf.mxu1 }
 0x51f   : > { %v1312_v63 = vadd.f32 %v1311_v51, %v1242_v34  ;;  %v2310_v34 = vld [vmem:[#allocation2 + $0xa8] sm:$0xff]  }
 0x520   : > { %v1373_v35 = vpop.f32.mrf.mxu1 }
 0x521   : > { %v1392_v59 = vadd.f32 %v1373_v35, %v1296_v50  ;;  %v2050_v35 = vld [vmem:[%s2992_s4 + $0x68] sm:$0xff] }
 0x522   : > { %v1375_v37 = vpop.f32.mrf.mxu1 }
 0x523   : > { %v1393_v1 = vadd.f32 %v1375_v37, %v1298_v55  ;;  %v1425_v11 = vadd.f32 %v1408_v6, %v1392_v59  ;;  %v2052_v37 = vld [vmem:[%s2992_s4 + $0x78] sm:$0xff] }
 0x524   : > { %v1377_v38 = vpop.f32.mrf.mxu1 }
 0x525   : > { %v1394_v53 = vadd.f32 %v1377_v38, %v1300_v43  ;;  %v1426_v12 = vadd.f32 %v1408_v6, %v1393_v1  ;;  %v1433_v22 = vmax.f32 %v1425_v11, 0.0 }
 0x526   : > { %v1379_v40 = vpop.f32.mrf.mxu1 }
 0x527   : > { %v1395_v57 = vadd.f32 %v1379_v40, %v1302_v46  ;;  %v1427_v4 = vadd.f32 %v1413_v61, %v1394_v53  ;;  %v1434_v23 = vmax.f32 %v1426_v12, 0.0 }
 0x528   : > { %v1383_v44 = vpop.f32.mrf.mxu1 }
 0x529   : > { %v1396_v49 = vadd.f32 %v1383_v44, %v1306_v42  ;;  %v1428_v7 = vadd.f32 %v1413_v61, %v1395_v57  ;;  %v1435_v16 = vmax.f32 %v1427_v4, 0.0 }
 0x52a   : > { %v1385_v54 = vpop.f32.mrf.mxu1 }
 0x52b   : > { %v1397_v58 = vadd.f32 %v1385_v54, %v1308_v47  ;;  %v1429_v2 = vadd.f32 %v1418_v45, %v1396_v49  ;;  %v1436_v17 = vmax.f32 %v1428_v7, 0.0  ;;  %v2252_v29 = vpack.i.bf16 %v1435_v16, %v1433_v22 }
 0x52c   : > { %v1387_v60 = vpop.f32.mrf.mxu1  ;;  %v1510_v31 = vpack.c.bf16 %v1435_v16, %v1433_v22 }
 0x52d   : > { %v1398_v3 = vadd.f32 %v1387_v60, %v1310_v56  ;;  %v1430_v8 = vadd.f32 %v1418_v45, %v1397_v58  ;;  %v1437_v13 = vmax.f32 %v1429_v2, 0.0  ;;  %v1511_v28 = vpack.c.bf16 %v1436_v17, %v1434_v23 }
 0x52e   : > { %v1389_v5 = vpop.f32.mrf.mxu1  ;;  %v2262_v30 = vpack.i.bf16 %v1436_v17, %v1434_v23 }
 0x52f   : > { %v1431_v9 = vadd.f32 %v1423_v41, %v1398_v3  ;;  %v1399_v10 = vadd.f32 %v1389_v5, %v1312_v63  ;;  %v1438_v18 = vmax.f32 %v1430_v8, 0.0 }
 0x531   : > { %v1439_v14 = vmax.f32 %v1431_v9, 0.0  ;;  %v1432_v15 = vadd.f32 %v1423_v41, %v1399_v10  ;;  %v2307_v9 = vld [vmem:[#allocation2 + $0x90] sm:$0xff]  }
 0x533   : > { %v1440_v19 = vmax.f32 %v1432_v15, 0.0  ;;  %v2247_v20 = vpack.i.bf16 %v1439_v14, %v1437_v13  ;;  %v1512_v27 = vpack.c.bf16 %v1439_v14, %v1437_v13 }
 0x535   : > { %2248 = vrot.lane.b32.xlu0 %v2247_v20, %s2411_s8  ;;  %v2257_v24 = vpack.i.bf16 %v1440_v19, %v1438_v18  ;;  %v1513_v26 = vpack.c.bf16 %v1440_v19, %v1438_v18 }
 0x537   : > { %2258 = vrot.lane.b32.xlu1 %v2257_v24, %s2411_s8  ;;  %1620 = vmatprep.subr.bf16.mxu1 %v1513_v26 }
 0x538   : > { %1621 = vmatpush1.bf16.msra.mxu1 %v1512_v27  ;;  %v2309_v27 = vld [vmem:[#allocation2 + $0x98] sm:$0xff]  }
 0x539   : > { %1622 = vmatprep.subr.bf16.mxu1 %v1511_v28  ;;  %2253 = vrot.lane.b32.xlu0 %v2252_v29, %s2411_s8  ;;  %v2312_v28 = vld [vmem:[#allocation2 + $0xb8] sm:$0xff]  }
 0x53b   : > { %2263 = vrot.lane.b32.xlu1 %v2262_v30, %s2411_s8  ;;  %s2343_s8 = sshll.u32 %s2415_s15, 4  ;;  %s2344_s8 = int_to_ptr.vmem [resolvable:$false] %s2343_s8 }
 0x53c   : > { %1623 = vmatpush1.bf16.msra.mxu1 %v1510_v31  ;;  %s2345_s16 = scalar_lea.vmem %s2344_s8, 2048 }
 0x53d   : > { %2268 = vrot.lane.b32.xlu0 %v2247_v20, %s2412_s9 }
 0x53f   : > { %2278 = vrot.lane.b32.xlu1 %v2257_v24, %s2412_s9  ;;  %2031 = vmatmul.mubr.msk.bf16.vlgmr.msra.gmra.mxu1 %vm328_vm0, %v2308_v32 }
 0x540   : > { %1650 = vmatprep.mubr.bf16.mxu1 %v2408_v0 }
 0x541   : > { %2273 = vrot.lane.b32.xlu0 %v2252_v29, %s2412_s9 }
 0x543   : > { %2283 = vrot.lane.b32.xlu1 %v2262_v30, %s2412_s9  ;;  %s230_s9 = sand.u32 1, %s2395_s19  }
 0x544   : > { %s1890_s30 = sshll.u32 %s230_s9, 6  ;;  %s2948_s14 = scalar_lea.sflag [#allocation4], %s230_s9 }
 0x545   : > { %1754 = vperm.xlu0 %2125, %v2049_v33   ;;  %s2927_s6 = scalar_lea.vmem [#allocation5], %s1890_s30 }
 0x546   : > { %s1810_s7 = sshll.u32 %s2927_s6, 4  ;;  %s2937_s7 = int_to_ptr.vmem [resolvable:$true] %s1810_s7 }
 0x547   : > { %1759 = vperm.xlu1 %2126, %v2050_v35   ;;  %2032 = vmatmul.mubr.msk.bf16.gmra.mxu1 %vm328_vm0, %v2310_v34  ;;  %s2339_s22 = scalar_lea.vmem %s2937_s7, 1024  ;;  %p2346_p11 = scmp.lt.s32.totalorder %s2937_s7, %s2344_s8 }
 0x548   : > { %p2340_p6 = scmp.ne.s32.totalorder %s2937_s7, %s2339_s22  ;;  %p2347_p12 = scmp.lt.s32.totalorder %s2345_s16, %s2339_s22 }
 0x549   : > { %1764 = vperm.xlu0 %2125, %v2051_v36  }
 0x54a   : > { %p2341_p9 = pnand %p2340_p6, %p2486_p5  ;;  %p2348_p13 = por %p2347_p12, %p2346_p11 }
 0x54b   : > { %1769 = vperm.xlu1 %2126, %v2052_v37  }
 0x54c   : > { %p2342_p10 = pneg %p2341_p9 }
 0x54e   : > { %p2349_p0 = pnand %p2348_p13, %p2342_p10 }
 0x5a7   : > { %v2249_v38 = vpop.permute.xlu0 %2248 }
 0x5a8   : > { %v2251_v40 = vunpack.i.h.bf16 %v2249_v38  ;;  %v2250_v41 = vunpack.i.l.bf16 %v2249_v38 }
 0x5a9   : > { %v2259_v39 = vpop.permute.xlu1 %2258 }
 0x5aa   : > { %v2261_v42 = vunpack.i.h.bf16 %v2259_v39  ;;  %v2260_v43 = vunpack.i.l.bf16 %v2259_v39 }
 0x5ab   : > { %v2254_v44 = vpop.permute.xlu0 %2253 }
 0x5ac   : > { %v1459_v45 = vsel %vm759_vm10, %v2250_v41, %v2260_v43  ;;  %v1460_v46 = vsel %vm759_vm10, %v2251_v40, %v2261_v42  ;;  %v1463_v47 = vsel %vm759_vm10, %v2260_v43, %v2250_v41  ;;  %v1464_v49 = vsel %vm759_vm10, %v2261_v42, %v2251_v40 }
 0x5ad   : > { %v2016_v50 = vpack.c.bf16 %v1460_v46, %v1459_v45  ;;  %v2019_v51 = vpack.c.bf16 %v1464_v49, %v1463_v47  ;;  %v2264_v53 = vpop.permute.xlu1 %2263  ;;  %v2256_v54 = vunpack.i.h.bf16 %v2254_v44  ;;  %v2255_v55 = vunpack.i.l.bf16 %v2254_v44 }
 0x5ae   : > { %v2266_v56 = vunpack.i.h.bf16 %v2264_v53  ;;  %v2265_v57 = vunpack.i.l.bf16 %v2264_v53 }
 0x5af   : > { %2017 = vmatprep.subr.msk.bf16.mxu0 %vm2681_vm13, %v2016_v50  ;;  %v2269_v58 = vpop.permute.xlu0 %2268 }
 0x5b0   : > { %v1457_v59 = vsel %vm759_vm10, %v2255_v55, %v2265_v57  ;;  %v1458_v60 = vsel %vm759_vm10, %v2256_v54, %v2266_v56  ;;  %v1461_v61 = vsel %vm759_vm10, %v2265_v57, %v2255_v55  ;;  %v1462_v63 = vsel %vm759_vm10, %v2266_v56, %v2256_v54  ;;  %2020 = vmatpush1.bf16.msk.msra.mxu0 %vm2685_vm14, %v2019_v51 }
 0x5b1   : > { %v2022_v1 = vpack.c.bf16 %v1458_v60, %v1457_v59  ;;  %v2025_v2 = vpack.c.bf16 %v1462_v63, %v1461_v61  ;;  %v2279_v3 = vpop.permute.xlu1 %2278  ;;  %v2271_v4 = vunpack.i.h.bf16 %v2269_v58  ;;  %v2270_v5 = vunpack.i.l.bf16 %v2269_v58 }
 0x5b2   : > { %v2281_v6 = vunpack.i.h.bf16 %v2279_v3  ;;  %v2280_v7 = vunpack.i.l.bf16 %v2279_v3 }
 0x5b3   : > { %v2274_v8 = vpop.permute.xlu0 %2273  ;;  %2023 = vmatprep.subr.msk.bf16.mxu0 %vm2681_vm13, %v2022_v1 }
 0x5b4   : > { %v1491_v10 = vsel %vm282_vm15, %v2270_v5, %v2280_v7  ;;  %v1492_v11 = vsel %vm282_vm15, %v2271_v4, %v2281_v6  ;;  %v1495_v12 = vsel %vm282_vm15, %v2280_v7, %v2270_v5  ;;  %v1496_v13 = vsel %vm282_vm15, %v2281_v6, %v2271_v4  ;;  %2026 = vmatpush1.bf16.msk.msra.mxu0 %vm2685_vm14, %v2025_v2 }
 0x5b5   : > { %v2036_v14 = vpack.c.bf16 %v1496_v13, %v1495_v12  ;;  %v2039_v15 = vpack.c.bf16 %v1492_v11, %v1491_v10  ;;  %v2284_v21 = vpop.permute.xlu1 %2283  ;;  %v2276_v16 = vunpack.i.h.bf16 %v2274_v8  ;;  %v2275_v17 = vunpack.i.l.bf16 %v2274_v8 }
 0x5b6   : > { %v2286_v18 = vunpack.i.h.bf16 %v2284_v21  ;;  %v2285_v19 = vunpack.i.l.bf16 %v2284_v21 }
 0x5b7   : > { %2027 = vmatmul.mubr.msk.bf16.vlgmr.msra.gmra.mxu0 %vm328_vm0, %v2307_v9  ;;  %2037 = vmatprep.subr.msk.bf16.mxu0 %vm2715_vm2, %v2036_v14 }
 0x5b8   : > { %v1489_v20 = vsel %vm282_vm15, %v2275_v17, %v2285_v19  ;;  %v1490_v22 = vsel %vm282_vm15, %v2276_v16, %v2286_v18  ;;  %v1493_v25 = vsel %vm282_vm15, %v2285_v19, %v2275_v17  ;;  %v1494_v23 = vsel %vm282_vm15, %v2286_v18, %v2276_v16  ;;  %2040 = vmatpush1.bf16.msk.msra.mxu0 %vm2722_vm3, %v2039_v15 }
 0x5b9   : > { %v2042_v24 = vpack.c.bf16 %v1494_v23, %v1493_v25  ;;  %v2045_v26 = vpack.c.bf16 %v1490_v22, %v1489_v20  ;;  %1581 = vmatprep.mubr.bf16.mxu0 %v2408_v0 }
 0x5bb   : > { %2043 = vmatprep.subr.msk.bf16.mxu0 %vm2715_vm2, %v2042_v24 }
 0x5bc   : > { %2046 = vmatpush1.bf16.msk.msra.mxu0 %vm2722_vm3, %v2045_v26 }
 0x5bf   : > { %2028 = vmatmul.mubr.msk.bf16.gmra.mxu0 %vm328_vm0, %v2309_v27 }
 0x5c0   : > { %1718 = vmatprep.mubr.bf16.mxu0 %v2408_v0  ;;  %v1755_v41 = vpop.permute.xlu0 %1754 }
 0x5c2   : > { %v1760_v51 = vpop.permute.xlu1 %1759 }
 0x5c4   : > { %v1765_v2 = vpop.permute.xlu0 %1764 }
 0x5c6   : > { %v1770_v17 = vpop.permute.xlu1 %1769 }
 0x5c7   : > { %2047 = vmatmul.mubr.msk.bf16.vlgmr.msra.gmra.mxu0 %vm328_vm0, %v2311_v62 }
 0x5c8   : > { %1728 = vmatprep.mubr.bf16.mxu0 %v2408_v0 }
 0x5cf   : > { %2048 = vmatmul.mubr.msk.bf16.gmra.mxu0 %vm328_vm0, %v2312_v28 }
 0x5ff   : > { %v1642_v29 = vpop.f32.mrf.mxu1 }
 0x601   : > { %v1644_v31 = vpop.f32.mrf.mxu1 }
 0x603   : > { %v1646_v33 = vpop.f32.mrf.mxu1 }
 0x605   : > { %v1648_v35 = vpop.f32.mrf.mxu1 }
 0x607   : > { %v1652_v38 = vpop.f32.mrf.mxu1 }
 0x609   : > { %v1654_v44 = vpop.f32.mrf.mxu1 }
 0x60b   : > { %v1656_v57 = vpop.f32.mrf.mxu1 }
 0x60d   : > { %v1658_v7 = vpop.f32.mrf.mxu1 }
 0x677   : > { %v1573_v48 = vpop.f32.mrf.mxu0 }
 0x678   : > { %v1643_v0 = vadd.f32 %v1642_v29, %v1573_v48 }
 0x679   : > { %v1575_v30 = vpop.f32.mrf.mxu0 }
 0x67a   : > { %v1645_v42 = vadd.f32 %v1644_v31, %v1575_v30 }
 0x67b   : > { %v1577_v52 = vpop.f32.mrf.mxu0 }
 0x67c   : > { %v1647_v46 = vadd.f32 %v1646_v33, %v1577_v52 }
 0x67d   : > { %v1579_v32 = vpop.f32.mrf.mxu0 }
 0x67e   : > { %v1649_v53 = vadd.f32 %v1648_v35, %v1579_v32 }
 0x67f   : > { %v1583_v34 = vpop.f32.mrf.mxu0 }
 0x680   : > { %v1653_v59 = vadd.f32 %v1652_v38, %v1583_v34 }
 0x681   : > { %v1585_v36 = vpop.f32.mrf.mxu0 }
 0x682   : > { %v1655_v3 = vadd.f32 %v1654_v44, %v1585_v36 }
 0x683   : > { %v1587_v37 = vpop.f32.mrf.mxu0 }
 0x684   : > { %v1657_v9 = vadd.f32 %v1656_v57, %v1587_v37 }
 0x685   : > { %v1589_v39 = vpop.f32.mrf.mxu0 }
 0x686   : > { %v1659_v14 = vadd.f32 %v1658_v7, %v1589_v39 }
 0x687   : > { %v1720_v40 = vpop.f32.mrf.mxu0 }
 0x688   : > { %v1739_v43 = vadd.f32 %v1720_v40, %v1643_v0 }
 0x689   : > { %v1722_v45 = vpop.f32.mrf.mxu0 }
 0x68a   : > { %v1772_v47 = vadd.f32 %v1755_v41, %v1739_v43  ;;  %v1740_v49 = vadd.f32 %v1722_v45, %v1645_v42 }
 0x68b   : > { %v1724_v50 = vpop.f32.mrf.mxu0 }
 0x68c   : > { %v1780_v54 = vmax.f32 %v1772_v47, 0.0  ;;  %v1773_v55 = vadd.f32 %v1755_v41, %v1740_v49  ;;  %v1741_v56 = vadd.f32 %v1724_v50, %v1647_v46 }
 0x68d   : > { %v1726_v58 = vpop.f32.mrf.mxu0 }
 0x68e   : > { %1788 = vst [vmem:[%s2927_s6] sm:$0xff] %v1780_v54  ;;  %v1781_v60 = vmax.f32 %v1773_v55, 0.0  ;;  %v1774_v61 = vadd.f32 %v1760_v51, %v1741_v56  ;;  %v1742_v63 = vadd.f32 %v1726_v58, %v1649_v53 }
 0x68f   : > { %v1730_v1 = vpop.f32.mrf.mxu0 }
 0x690   : > { %1789 = vst [vmem:[%s2927_s6 + $0x8] sm:$0xff] %v1781_v60  ;;  %v1782_v4 = vmax.f32 %v1774_v61, 0.0  ;;  %v1775_v5 = vadd.f32 %v1760_v51, %v1742_v63  ;;  %v1743_v6 = vadd.f32 %v1730_v1, %v1653_v59 }
 0x691   : > { %v1732_v8 = vpop.f32.mrf.mxu0 }
 0x692   : > { %1790 = vst [vmem:[%s2927_s6 + $0x10] sm:$0xff] %v1782_v4  ;;  %v1783_v10 = vmax.f32 %v1775_v5, 0.0  ;;  %v1776_v11 = vadd.f32 %v1765_v2, %v1743_v6  ;;  %v1744_v12 = vadd.f32 %v1732_v8, %v1655_v3 }
 0x693   : > { %v1734_v13 = vpop.f32.mrf.mxu0 }
 0x694   : > { %1791 = vst [vmem:[%s2927_s6 + $0x18] sm:$0xff] %v1783_v10  ;;  %v1784_v15 = vmax.f32 %v1776_v11, 0.0  ;;  %v1777_v21 = vadd.f32 %v1765_v2, %v1744_v12  ;;  %v1745_v16 = vadd.f32 %v1734_v13, %v1657_v9 }
 0x695   : > { %v1736_v18 = vpop.f32.mrf.mxu0 }
 0x696   : > { %1792 = vst [vmem:[%s2927_s6 + $0x20] sm:$0xff] %v1784_v15  ;;  %v1785_v19 = vmax.f32 %v1777_v21, 0.0  ;;  %v1778_v20 = vadd.f32 %v1770_v17, %v1745_v16  ;;  %v1746_v22 = vadd.f32 %v1736_v18, %v1659_v14 }
 0x698   : > { %1793 = vst [vmem:[%s2927_s6 + $0x28] sm:$0xff] %v1785_v19  ;;  %v1786_v25 = vmax.f32 %v1778_v20, 0.0  ;;  %v1779_v23 = vadd.f32 %v1770_v17, %v1746_v22 }
 0x69a   : > { %1794 = vst [vmem:[%s2927_s6 + $0x30] sm:$0xff] %v1786_v25  ;;  %v1787_v24 = vmax.f32 %v1779_v23, 0.0 }
 0x69c   : > { %1795 = vst [vmem:[%s2927_s6 + $0x38] sm:$0xff] %v1787_v24 }
 0x69d   : > { %2352 = shalt.err (!%p2349_p0)
}
 0x69e   : > { %s2353_s17 = scalar_lea.hbm %s2943_s13, 1024  ;;  %s2357_s26 = scalar_lea.hbm %s2993_s5, 2048 }
 0x69f   : > { %p2354_p1 = scmp.ne.s32.totalorder %s2943_s13, %s2353_s17  ;;  %p2358_p4 = scmp.lt.s32.totalorder %s2943_s13, %s2993_s5 }
 0x6a0   : > { %p2359_p7 = scmp.lt.s32.totalorder %s2357_s26, %s2353_s17 }
 0x6a1   : > { %p2355_p2 = pnand %p2354_p1, %p2486_p5 }
 0x6a2   : > { %p2360_p8 = por %p2359_p7, %p2358_p4 }
 0x6a3   : > { %p2356_p3 = pneg %p2355_p2 }
 0x6a5   : > { %p2361_p6 = pnand %p2360_p8, %p2356_p3 }
 0x6a7   : > { %2364 = shalt.err (!%p2361_p6)
}
 0x6a8   : > { %s2416_s6 = smov 256   ;;  %s2417_s10 = smov 16  }
 0x6a9   : > { %2068 = dma.vmem_to_hbm [thread:$0]  (%p2486_p5), %s2937_s7, 1024, %s2943_s13, %s2948_s14, %s2416_s6, %s2416_s6, %s2417_s10  }
 0x6aa PF: > { %p2080_p9 = scmp.ge.s32.totalorder %s2403_s21, 2  ;;  %s1825_s11 = sand.u32 1, %s2391_s18  }
 0x6ab   : > { %p3021_p10 = scmp.ne.s32.totalorder %s2995_s29, 0  ;;  %s1826_s12 = scalar_lea.sflag [#allocation4], %s1825_s11 }
 0x6ad   : > { %p2075_p11 = pnand %p2080_p9, %p3021_p10 }
 0x6af   : > { %p2076_p12 = pneg %p2075_p11 }
 0x6b1   : > { %2386 = dma.done.wait (%p2076_p12), %s1826_s12, 1024  }
 0x6b2   : > { %2388 = vsyncadd (%p2076_p12), %s1826_s12, 4294966272  ;;  %p16_p13 = scmp.ge.s32.totalorder %s2473_s24, 4   ;;  %s3022_s18 = smov %s2395_s19 }
 0x6b3   : > { %s3023_s19 = smov %s2399_s20  ;;  %s3024_s20 = smov %s2484_s27 }
 0x6b4   : > { %s3025_s21 = smov %s2473_s24  ;;  %18 = sbr.rel (!%p16_p13) target bundleno = 4 (0x4), region = 94 }
 0x6b9   :  { %1831 = vsyncpa [#allocation3], 1 }
 0x6ba   :  { %1833 = vsyncpa [#allocation3 + $0x1], 1 }
 0x6bb   :  { %1834 = vsyncpa [#allocation4], 1 }
 0x6bc   :  { %1836 = vsyncpa [#allocation4 + $0x1], 1 }

</bundles_post_ra>
